<compile_context>
chip_gen: v7x
topology: tpu7x:2x2x1
jax: 0.10.0
libtpu: 0.0.40
codegen_flags: <defaults>
</compile_context>

<pallas_src>
import jax
import jax.numpy as jnp
from jax.experimental import pallas as pl
from jax.experimental.pallas import tpu as pltpu


def _round_up(x, m):
    return (x + m - 1) // m * m


# ----------------------------------------------------------------------------
# Kernel 1: single-layer GRU recurrence (input projection hoisted to wrapper)
# ----------------------------------------------------------------------------
def _time_kernel(gi_ref, whh_ref, bhh_ref, h_out_ref):
    # gi_ref  : [1, T, tile_n, 3Hp] f32  pre-projected inputs (enc+emb+W_ih folded)
    # whh_ref : [Hp, 3Hp]           bf16 concatenated hidden->gate weights (r|z|n)
    # bhh_ref : [1, 3Hp]            f32
    # h_out   : [1, tile_n, Hp]     f32  last hidden state (lane-dense, Hp % 128 == 0)
    T = gi_ref.shape[1]
    tile_n = gi_ref.shape[2]
    Hp = whh_ref.shape[0]

    whh = whh_ref[...]
    bhh = bhh_ref[...]

    h = jnp.zeros((tile_n, Hp), jnp.float32)
    # TODO(synk): for long windows switch this unrolled loop to lax.fori_loop with
    # h staged in a VMEM scratch to bound live ranges.
    for t in range(T):
        gi = gi_ref[0, t]                                   # [tile_n, 3Hp], one step at a time
        gh = jnp.dot(h.astype(jnp.bfloat16), whh,
                     preferred_element_type=jnp.float32) + bhh
        # PyTorch GRU gate order (r, z, n); all lane slices are 128-aligned.
        r = jax.nn.sigmoid(gi[:, 0:Hp] + gh[:, 0:Hp])
        z = jax.nn.sigmoid(gi[:, Hp:2 * Hp] + gh[:, Hp:2 * Hp])
        n = jnp.tanh(gi[:, 2 * Hp:3 * Hp] + r * gh[:, 2 * Hp:3 * Hp])
        h = (1.0 - z) * n + z * h

    h_out_ref[0] = h


def _pick_node_tile(n_nodes, window, g3, bytes_cap=4 * 1024 * 1024):
    """Largest multiple-of-8 node tile whose double-buffered gi block fits bytes_cap."""
    per_row = window * g3 * 4                        # f32 bytes per node row of the gi block
    cap_rows = max(8, bytes_cap // (2 * per_row))
    tile = min(_round_up(n_nodes, 8), (cap_rows // 8) * 8)
    return max(tile, 8)


def run_time_nn(gi, whh, bhh, tile_n):
    B, T, Nnp, G3 = gi.shape
    Hp = whh.shape[0]
    grid = (B, Nnp // tile_n)
    return pl.pallas_call(
        _time_kernel,
        out_shape=jax.ShapeDtypeStruct((B, Nnp, Hp), jnp.float32),
        grid_spec=pltpu.PrefetchScalarGridSpec(
            num_scalar_prefetch=0,
            grid=grid,
            in_specs=[
                pl.BlockSpec((1, T, tile_n, G3), lambda b, i: (b, 0, i, 0)),  # gi
                pl.BlockSpec((Hp, G3), lambda b, i: (0, 0)),                  # W_hh_cat
                pl.BlockSpec((1, G3), lambda b, i: (0, 0)),                   # b_hh_cat
            ],
            out_specs=pl.BlockSpec((1, tile_n, Hp), lambda b, i: (b, i, 0)),
        ),
        compiler_params=pltpu.CompilerParams(
            dimension_semantics=("parallel", "parallel"),
            vmem_limit_bytes=32 * 1024 * 1024),
    )(gi, whh, bhh)


# ----------------------------------------------------------------------------
# Kernel 2: DiffConv (k fwd/bwd hops) + decoder Linear, one program per batch
# ----------------------------------------------------------------------------
def _space_kernel(x_ref, afwd_ref, abwd_ref, wf_ref, bf_ref, wd_ref, bd_ref,
                  out_ref):
    # x_ref    : [1, Nnp, Hp]     bf16  GRU last states for this batch (node-major)
    # afwd/abwd: [Nnp, Nnp]       bf16  dense normalized supports
    # wf_ref   : [(2k+1)*Hp, Hp]  bf16  concatenated filter weights [root|fwd|bwd]
    # bf_ref   : [1, Hp]          f32
    # wd_ref   : [Hp, D_outp]     bf16
    # bd_ref   : [1, D_outp]      f32
    # out_ref  : [1, Nnp, D_outp] f32   lane-dense output slab
    Hp = wd_ref.shape[0]
    n_filters = wf_ref.shape[0] // Hp
    k = (n_filters - 1) // 2

    x0 = x_ref[0]                                           # [Nnp, Hp]
    hops = [x0]
    # TODO(synk): for large graphs (N >~ 1k, esp. v7x 64 MiB VMEM) tile the node
    # dimension of the [N,N] supports instead of holding them fully resident.
    for a_ref in (afwd_ref, abwd_ref):
        a = a_ref[...]
        xs = x0
        for _ in range(k):
            xs = jnp.dot(a, xs, preferred_element_type=jnp.float32
                         ).astype(jnp.bfloat16)             # one matmul per hop
            hops.append(xs)

    # hop features at 128-aligned lane offsets -> single deep-K filter matmul.
    feats = jnp.concatenate(hops, axis=1)                   # [Nnp, (2k+1)*Hp]
    z = jnp.dot(feats, wf_ref[...], preferred_element_type=jnp.float32) + bf_ref[...]
    out = jnp.dot(z.astype(jnp.bfloat16), wd_ref[...],
                  preferred_element_type=jnp.float32) + bd_ref[...]
    out_ref[0] = out


def run_space_nn(h_bf16, a_fwd, a_bwd, wf, bf, wd, bd):
    B, Nnp, Hp = h_bf16.shape
    KH = wf.shape[0]
    D_outp = wd.shape[1]
    return pl.pallas_call(
        _space_kernel,
        out_shape=jax.ShapeDtypeStruct((B, Nnp, D_outp), jnp.float32),
        grid_spec=pltpu.PrefetchScalarGridSpec(
            num_scalar_prefetch=0,
            grid=(B,),
            in_specs=[
                pl.BlockSpec((1, Nnp, Hp), lambda b: (b, 0, 0)),
                pl.BlockSpec((Nnp, Nnp), lambda b: (0, 0)),
                pl.BlockSpec((Nnp, Nnp), lambda b: (0, 0)),
                pl.BlockSpec((KH, Hp), lambda b: (0, 0)),
                pl.BlockSpec((1, Hp), lambda b: (0, 0)),
                pl.BlockSpec((Hp, D_outp), lambda b: (0, 0)),
                pl.BlockSpec((1, D_outp), lambda b: (0, 0)),
            ],
            out_specs=pl.BlockSpec((1, Nnp, D_outp), lambda b: (b, 0, 0)),
        ),
        compiler_params=pltpu.CompilerParams(
            dimension_semantics=("parallel",),
            vmem_limit_bytes=32 * 1024 * 1024),
    )(h_bf16, a_fwd, a_bwd, wf, bf, wd, bd)


# ----------------------------------------------------------------------------
# Glue: dense normalized transition matrices (DiffConv supports)
# ----------------------------------------------------------------------------
def dense_supports(edge_index, edge_weight, n_nodes, n_pad):
    src, tgt = edge_index[0], edge_index[1]
    A = jnp.zeros((n_nodes, n_nodes), jnp.float32).at[tgt, src].add(edge_weight)

    def row_norm(M):
        d = M.sum(axis=1, keepdims=True)
        return M / jnp.where(d > 0, d, 1.0)

    af, ab = row_norm(A), row_norm(A.T)
    if n_pad != n_nodes:
        pad = ((0, n_pad - n_nodes), (0, n_pad - n_nodes))
        af, ab = jnp.pad(af, pad), jnp.pad(ab, pad)
    return af.astype(jnp.bfloat16), ab.astype(jnp.bfloat16)


# ----------------------------------------------------------------------------
# Parameter init (module-shaped) and algebraic fusion / lane padding
# ----------------------------------------------------------------------------
def init_params(key, input_size, n_nodes, horizon, hidden_size, gnn_kernel):
    keys = jax.random.split(key, 12)
    u = lambda k, shape, bound: jax.random.uniform(
        k, shape, jnp.float32, -bound, bound)

    H, F_in = hidden_size, input_size
    n_filters = 2 * gnn_kernel + 1
    D_out = F_in * horizon
    return {
        "enc_w": u(keys[0], (F_in, H), 1.0 / jnp.sqrt(F_in)),
        "enc_b": u(keys[1], (1, H), 1.0 / jnp.sqrt(F_in)),
        "node_emb": u(keys[2], (n_nodes, H), 0.1),
        "gru_wih": u(keys[3], (3, H, H), 1.0 / jnp.sqrt(H)),
        "gru_whh": u(keys[4], (3, H, H), 1.0 / jnp.sqrt(H)),
        "gru_bih": u(keys[5], (3, 1, H), 1.0 / jnp.sqrt(H)),
        "gru_bhh": u(keys[6], (3, 1, H), 1.0 / jnp.sqrt(H)),
        "filt_w": u(keys[7], (n_filters, H, H), 1.0 / jnp.sqrt(n_filters * H)),
        "filt_b": u(keys[8], (1, H), 1.0 / jnp.sqrt(n_filters * H)),
        "dec_w": u(keys[9], (H, D_out), 1.0 / jnp.sqrt(H)),
        "dec_b": u(keys[10], (1, D_out), 1.0 / jnp.sqrt(H)),
    }


def fuse_params(params, Hp, D_outp):
    """Concatenate GRU gates (r,z,n) into [.,3H], fold encoder+embedding into the
    GRU input projection (exact algebra), and zero-pad every lane axis to 128
    multiples (Hp, 3Hp, D_outp) so all kernel slices/stores are lane-aligned."""
    H = params["enc_w"].shape[1]
    hi = jax.lax.Precision.HIGHEST

    wih_cat = jnp.concatenate([params["gru_wih"][g] for g in range(3)], axis=1)  # [H,3H]
    whh_cat = jnp.concatenate([params["gru_whh"][g] for g in range(3)], axis=1)  # [H,3H]
    bih_cat = jnp.concatenate([params["gru_bih"][g] for g in range(3)], axis=1)  # [1,3H]
    bhh_cat = jnp.concatenate([params["gru_bhh"][g] for g in range(3)], axis=1)  # [1,3H]

    wx = jnp.dot(params["enc_w"], wih_cat, precision=hi)                         # [F_in,3H]
    bx = jnp.dot(params["enc_b"] + params["node_emb"], wih_cat,
                 precision=hi) + bih_cat                                         # [N,3H] (per node, NOT batch-replicated)

    def pad_cols(a, to):
        return jnp.pad(a, [(0, 0)] * (a.ndim - 1) + [(0, to - a.shape[-1])])

    def pad_gates(a):  # [..., 3H] -> [..., 3Hp], gate-wise so offsets stay aligned
        return jnp.concatenate(
            [pad_cols(a[..., g * H:(g + 1) * H], Hp) for g in range(3)], axis=-1)

    whh_p = pad_gates(jnp.pad(whh_cat, ((0, Hp - H), (0, 0))))                   # [Hp,3Hp]

    fw = params["filt_w"]
    wf_p = jnp.concatenate(
        [jnp.pad(fw[s], ((0, Hp - H), (0, Hp - H))) for s in range(fw.shape[0])],
        axis=0)                                                                  # [(2k+1)Hp,Hp]
    wd_p = jnp.pad(params["dec_w"],
                   ((0, Hp - H), (0, D_outp - params["dec_w"].shape[1])))        # [Hp,D_outp]

    return {
        "wx": pad_gates(wx),                        # [F_in, 3Hp] f32 (used in wrapper projection)
        "bx": pad_gates(bx),                        # [N, 3Hp]    f32
        "whh": whh_p.astype(jnp.bfloat16),          # [Hp, 3Hp]
        "bhh": pad_gates(bhh_cat),                  # [1, 3Hp]    f32
        "wf": wf_p.astype(jnp.bfloat16),            # [(2k+1)Hp, Hp]
        "bf": pad_cols(params["filt_b"], Hp),       # [1, Hp]     f32
        "wd": wd_p.astype(jnp.bfloat16),            # [Hp, D_outp]
        "bd": pad_cols(params["dec_b"], D_outp),    # [1, D_outp] f32
    }


# ----------------------------------------------------------------------------
# Full forward: TimeThenSpaceModel
# ----------------------------------------------------------------------------
def time_then_space_forward(x, edge_index, edge_weight, params):
    B, T, N, F_in = x.shape
    H = params["enc_w"].shape[1]
    D_out = params["dec_w"].shape[1]
    horizon = D_out // F_in

    Hp = _round_up(H, 128)
    G3 = 3 * Hp
    D_outp = _round_up(D_out, 128)

    fused = fuse_params(params, Hp, D_outp)

    tile_n = _pick_node_tile(N, T, G3)
    Nnp = _round_up(N, tile_n)                     # pad nodes -> tile always divides

    # ---- input projection (encoder + node-embedding + GRU W_ih) in XLA glue ----
    # TODO(synk): for very large T*N the [B,T,N,3Hp] gi tensor costs HBM bandwidth;
    # move this matmul back into kernel 1 (with F_in padded) if that becomes binding.
    gi = jnp.einsum('btnf,fg->btng', x, fused["wx"],
                    precision=jax.lax.Precision.HIGHEST) + fused["bx"][None, None]
    if Nnp != N:
        gi = jnp.pad(gi, ((0, 0), (0, 0), (0, Nnp - N), (0, 0)))

    # ---- time part: GRU recurrence kernel ----
    h_last = run_time_nn(gi, fused["whh"], fused["bhh"], tile_n)   # [B, Nnp, Hp] f32

    # ---- space part: DiffConv + decoder kernel ----
    a_fwd, a_bwd = dense_supports(edge_index, edge_weight, N, Nnp)
    out = run_space_nn(h_last.astype(jnp.bfloat16), a_fwd, a_bwd,
                       fused["wf"], fused["bf"], fused["wd"], fused["bd"])  # [B,Nnp,D_outp]

    # strip lane/node padding, then rearrange 'b n (t f) -> b t n f'
    out = out[:, :N, :D_out]
    return out.reshape(B, N, horizon, F_in).transpose(0, 2, 1, 3)


# ----------------------------------------------------------------------------
# Pure-JAX reference (unfused, f32) for correctness checking
# ----------------------------------------------------------------------------
def reference_forward(x, edge_index, edge_weight, params):
    B, T, N, F_in = x.shape
    H = params["enc_w"].shape[1]
    horizon = params["dec_w"].shape[1] // F_in

    x_enc = jnp.einsum('btnf,fh->btnh', x, params["enc_w"],
                       precision=jax.lax.Precision.HIGHEST) + params["enc_b"]
    x_emb = x_enc + params["node_emb"]                              # [B,T,N,H]

    wih, whh = params["gru_wih"], params["gru_whh"]
    bih, bhh = params["gru_bih"], params["gru_bhh"]
    h = jnp.zeros((B, N, H), jnp.float32)
    for t in range(T):
        xt = x_emb[:, t]
        gi = [xt @ wih[g] + bih[g] for g in range(3)]
        gh = [h @ whh[g] + bhh[g] for g in range(3)]
        r = jax.nn.sigmoid(gi[0] + gh[0])
        z = jax.nn.sigmoid(gi[1] + gh[1])
        n = jnp.tanh(gi[2] + r * gh[2])
        h = (1.0 - z) * n + z * h

    src, tgt = edge_index[0], edge_index[1]
    A = jnp.zeros((N, N), jnp.float32).at[tgt, src].add(edge_weight)

    def row_norm(M):
        d = M.sum(axis=1, keepdims=True)
        return M / jnp.where(d > 0, d, 1.0)

    af, ab = row_norm(A), row_norm(A.T)
    k = (params["filt_w"].shape[0] - 1) // 2
    hops = [h]
    for a in (af, ab):
        xs = h
        for _ in range(k):
            xs = jnp.einsum('ij,bjh->bih', a, xs)
            hops.append(xs)
    z = sum(hops[s] @ params["filt_w"][s] for s in range(len(hops))) + params["filt_b"]
    out = z @ params["dec_w"] + params["dec_b"]                     # [B,N,horizon*F_in]
    return out.reshape(B, N, horizon, F_in).transpose(0, 2, 1, 3)


if __name__ == "__main__":
    # small, module-consistent shapes
    B, T, N, F_in = 2, 8, 16, 4          # batch, window, n_nodes, input_size
    H, horizon, k = 32, 3, 2             # hidden_size, horizon, gnn_kernel

    key = jax.random.PRNGKey(0)
    k_x, k_w, k_p = jax.random.split(key, 3)

    x = jax.random.normal(k_x, (B, T, N, F_in), jnp.float32)

    # simple deterministic graph: ring edges + skip-3 edges
    idx = jnp.arange(N, dtype=jnp.int32)
    src = jnp.concatenate([idx, idx])
    tgt = jnp.concatenate([(idx + 1) % N, (idx + 3) % N])
    edge_index = jnp.stack([src, tgt], axis=0)                       # [2, E]
    edge_weight = jax.random.uniform(k_w, (edge_index.shape[1],),
                                     jnp.float32, 0.1, 1.0)

    params = init_params(k_p, F_in, N, horizon, H, k)

    fwd = jax.jit(time_then_space_forward)
    out = jax.block_until_ready(fwd(x, edge_index, edge_weight, params))
    assert out.shape == (B, horizon, N, F_in), out.shape

    ref = reference_forward(x, edge_index, edge_weight, params)
    max_err = float(jnp.max(jnp.abs(out - ref)))
    assert max_err < 1e-1, f"max abs error vs f32 reference: {max_err}"

    print("KERNEL_OK")
</pallas_src>

<mosaic_0001>
module attributes {stable_mosaic.version = 11 : i64} {
  func.func private @main(%arg0: i32) attributes {dimension_semantics = [#tpu.dimension_semantics<core_parallel>], iteration_bounds = array<i64: 2>, tpu.core_type = #tpu.core_type<sc_scalar_subcore>, window_params = []} {
    return
  }
}

module attributes {stable_mosaic.version = 11 : i64} {
  func.func private @main(%arg0: i32) attributes {dimension_semantics = [#tpu.dimension_semantics<core_parallel>], iteration_bounds = array<i64: 2>, tpu.core_type = #tpu.core_type<sc_scalar_subcore>, window_params = []} {
    return
  }
}

module attributes {stable_mosaic.version = 11 : i64} {
  func.func @_time_kernel(%arg0: i32, %arg1: i32, %arg2: memref<1x8x16x384xf32, #tpu.memory_space<vmem>>, %arg3: memref<128x384xbf16, #tpu.memory_space<vmem>>, %arg4: memref<1x384xf32, #tpu.memory_space<vmem>>, %arg5: memref<1x16x128xf32, #tpu.memory_space<vmem>>) attributes {dimension_semantics = [#tpu.dimension_semantics<parallel>, #tpu.dimension_semantics<parallel>], iteration_bounds = array<i64: 2, 1>, scalar_prefetch = 0 : i64, scratch_operands = 0 : i64, tpu.core_type = #tpu.core_type<tc>, window_params = [{transform_indices = @transform_0, window_bounds = array<i64: 1, 8, 16, 384>}, {pipeline_mode = #tpu.pipeline_mode<synchronous>, transform_indices = @transform_1, window_bounds = array<i64: 128, 384>}, {pipeline_mode = #tpu.pipeline_mode<synchronous>, transform_indices = @transform_2, window_bounds = array<i64: 1, 384>}, {transform_indices = @transform_3, window_bounds = array<i64: 1, 16, 128>}]} {
    %c0 = arith.constant 0 : index
    %c0_0 = arith.constant 0 : index
    %0 = vector.load %arg3[%c0, %c0_0] : memref<128x384xbf16, #tpu.memory_space<vmem>>, vector<128x384xbf16>
    %c0_1 = arith.constant 0 : index
    %c0_2 = arith.constant 0 : index
    %1 = vector.load %arg4[%c0_1, %c0_2] : memref<1x384xf32, #tpu.memory_space<vmem>>, vector<1x384xf32>
    %cst = arith.constant 0.000000e+00 : f32
    %2 = vector.broadcast %cst : f32 to vector<16x128xf32>
    %c0_3 = arith.constant 0 : index
    %c0_4 = arith.constant 0 : index
    %c0_5 = arith.constant 0 : index
    %c0_6 = arith.constant 0 : index
    %3 = vector.load %arg2[%c0_3, %c0_4, %c0_5, %c0_6] : memref<1x8x16x384xf32, #tpu.memory_space<vmem>>, vector<1x1x16x384xf32>
    %4 = vector.shape_cast %3 : vector<1x1x16x384xf32> to vector<16x384xf32>
    %5 = arith.truncf %2 : vector<16x128xf32> to vector<16x128xbf16>
    %cst_7 = arith.constant dense<0.000000e+00> : vector<16x384xf32>
    %6 = tpu.matmul %5, %0, %cst_7 {dimension_numbers = #tpu.dot_dimension_numbers<[1], [0], [0], [1], [0, 0, 1, 1], [], []>} : vector<16x128xbf16>, vector<128x384xbf16>, vector<16x384xf32> -> vector<16x384xf32>
    %7 = vector.broadcast %1 : vector<1x384xf32> to vector<16x384xf32>
    %8 = arith.addf %6, %7 : vector<16x384xf32>
    %9 = vector.extract_strided_slice %4 {offsets = [0, 0], sizes = [16, 128], strides = [1, 1]} : vector<16x384xf32> to vector<16x128xf32>
    %10 = vector.extract_strided_slice %8 {offsets = [0, 0], sizes = [16, 128], strides = [1, 1]} : vector<16x384xf32> to vector<16x128xf32>
    %11 = arith.addf %9, %10 : vector<16x128xf32>
    %12 = arith.negf %11 : vector<16x128xf32>
    %13 = math.exp %12 : vector<16x128xf32>
    %cst_8 = arith.constant 1.000000e+00 : f32
    %14 = vector.broadcast %cst_8 : f32 to vector<16x128xf32>
    %15 = arith.addf %14, %13 : vector<16x128xf32>
    %16 = arith.divf %14, %15 : vector<16x128xf32>
    %17 = vector.extract_strided_slice %4 {offsets = [0, 128], sizes = [16, 128], strides = [1, 1]} : vector<16x384xf32> to vector<16x128xf32>
    %18 = vector.extract_strided_slice %8 {offsets = [0, 128], sizes = [16, 128], strides = [1, 1]} : vector<16x384xf32> to vector<16x128xf32>
    %19 = arith.addf %17, %18 : vector<16x128xf32>
    %20 = arith.negf %19 : vector<16x128xf32>
    %21 = math.exp %20 : vector<16x128xf32>
    %cst_9 = arith.constant 1.000000e+00 : f32
    %22 = vector.broadcast %cst_9 : f32 to vector<16x128xf32>
    %23 = arith.addf %22, %21 : vector<16x128xf32>
    %24 = arith.divf %22, %23 : vector<16x128xf32>
    %25 = vector.extract_strided_slice %4 {offsets = [0, 256], sizes = [16, 128], strides = [1, 1]} : vector<16x384xf32> to vector<16x128xf32>
    %26 = vector.extract_strided_slice %8 {offsets = [0, 256], sizes = [16, 128], strides = [1, 1]} : vector<16x384xf32> to vector<16x128xf32>
    %27 = arith.mulf %16, %26 : vector<16x128xf32>
    %28 = arith.addf %25, %27 : vector<16x128xf32>
    %29 = math.tanh %28 : vector<16x128xf32>
    %cst_10 = arith.constant 1.000000e+00 : f32
    %30 = vector.broadcast %cst_10 : f32 to vector<16x128xf32>
    %31 = arith.subf %30, %24 : vector<16x128xf32>
    %32 = arith.mulf %31, %29 : vector<16x128xf32>
    %33 = arith.mulf %24, %2 : vector<16x128xf32>
    %34 = arith.addf %32, %33 : vector<16x128xf32>
    %c0_11 = arith.constant 0 : index
    %c1 = arith.constant 1 : index
    %c0_12 = arith.constant 0 : index
    %c0_13 = arith.constant 0 : index
    %35 = vector.load %arg2[%c0_11, %c1, %c0_12, %c0_13] : memref<1x8x16x384xf32, #tpu.memory_space<vmem>>, vector<1x1x16x384xf32>
    %36 = vector.shape_cast %35 : vector<1x1x16x384xf32> to vector<16x384xf32>
    %37 = arith.truncf %34 : vector<16x128xf32> to vector<16x128xbf16>
    %cst_14 = arith.constant dense<0.000000e+00> : vector<16x384xf32>
    %38 = tpu.matmul %37, %0, %cst_14 {dimension_numbers = #tpu.dot_dimension_numbers<[1], [0], [0], [1], [0, 0, 1, 1], [], []>} : vector<16x128xbf16>, vector<128x384xbf16>, vector<16x384xf32> -> vector<16x384xf32>
    %39 = vector.broadcast %1 : vector<1x384xf32> to vector<16x384xf32>
    %40 = arith.addf %38, %39 : vector<16x384xf32>
    %41 = vector.extract_strided_slice %36 {offsets = [0, 0], sizes = [16, 128], strides = [1, 1]} : vector<16x384xf32> to vector<16x128xf32>
    %42 = vector.extract_strided_slice %40 {offsets = [0, 0], sizes = [16, 128], strides = [1, 1]} : vector<16x384xf32> to vector<16x128xf32>
    %43 = arith.addf %41, %42 : vector<16x128xf32>
    %44 = arith.negf %43 : vector<16x128xf32>
    %45 = math.exp %44 : vector<16x128xf32>
    %cst_15 = arith.constant 1.000000e+00 : f32
    %46 = vector.broadcast %cst_15 : f32 to vector<16x128xf32>
    %47 = arith.addf %46, %45 : vector<16x128xf32>
    %48 = arith.divf %46, %47 : vector<16x128xf32>
    %49 = vector.extract_strided_slice %36 {offsets = [0, 128], sizes = [16, 128], strides = [1, 1]} : vector<16x384xf32> to vector<16x128xf32>
    %50 = vector.extract_strided_slice %40 {offsets = [0, 128], sizes = [16, 128], strides = [1, 1]} : vector<16x384xf32> to vector<16x128xf32>
    %51 = arith.addf %49, %50 : vector<16x128xf32>
    %52 = arith.negf %51 : vector<16x128xf32>
    %53 = math.exp %52 : vector<16x128xf32>
    %cst_16 = arith.constant 1.000000e+00 : f32
    %54 = vector.broadcast %cst_16 : f32 to vector<16x128xf32>
    %55 = arith.addf %54, %53 : vector<16x128xf32>
    %56 = arith.divf %54, %55 : vector<16x128xf32>
    %57 = vector.extract_strided_slice %36 {offsets = [0, 256], sizes = [16, 128], strides = [1, 1]} : vector<16x384xf32> to vector<16x128xf32>
    %58 = vector.extract_strided_slice %40 {offsets = [0, 256], sizes = [16, 128], strides = [1, 1]} : vector<16x384xf32> to vector<16x128xf32>
    %59 = arith.mulf %48, %58 : vector<16x128xf32>
    %60 = arith.addf %57, %59 : vector<16x128xf32>
    %61 = math.tanh %60 : vector<16x128xf32>
    %cst_17 = arith.constant 1.000000e+00 : f32
    %62 = vector.broadcast %cst_17 : f32 to vector<16x128xf32>
    %63 = arith.subf %62, %56 : vector<16x128xf32>
    %64 = arith.mulf %63, %61 : vector<16x128xf32>
    %65 = arith.mulf %56, %34 : vector<16x128xf32>
    %66 = arith.addf %64, %65 : vector<16x128xf32>
    %c0_18 = arith.constant 0 : index
    %c2 = arith.constant 2 : index
    %c0_19 = arith.constant 0 : index
    %c0_20 = arith.constant 0 : index
    %67 = vector.load %arg2[%c0_18, %c2, %c0_19, %c0_20] : memref<1x8x16x384xf32, #tpu.memory_space<vmem>>, vector<1x1x16x384xf32>
    %68 = vector.shape_cast %67 : vector<1x1x16x384xf32> to vector<16x384xf32>
    %69 = arith.truncf %66 : vector<16x128xf32> to vector<16x128xbf16>
    %cst_21 = arith.constant dense<0.000000e+00> : vector<16x384xf32>
    %70 = tpu.matmul %69, %0, %cst_21 {dimension_numbers = #tpu.dot_dimension_numbers<[1], [0], [0], [1], [0, 0, 1, 1], [], []>} : vector<16x128xbf16>, vector<128x384xbf16>, vector<16x384xf32> -> vector<16x384xf32>
    %71 = vector.broadcast %1 : vector<1x384xf32> to vector<16x384xf32>
    %72 = arith.addf %70, %71 : vector<16x384xf32>
    %73 = vector.extract_strided_slice %68 {offsets = [0, 0], sizes = [16, 128], strides = [1, 1]} : vector<16x384xf32> to vector<16x128xf32>
    %74 = vector.extract_strided_slice %72 {offsets = [0, 0], sizes = [16, 128], strides = [1, 1]} : vector<16x384xf32> to vector<16x128xf32>
    %75 = arith.addf %73, %74 : vector<16x128xf32>
    %76 = arith.negf %75 : vector<16x128xf32>
    %77 = math.exp %76 : vector<16x128xf32>
    %cst_22 = arith.constant 1.000000e+00 : f32
    %78 = vector.broadcast %cst_22 : f32 to vector<16x128xf32>
    %79 = arith.addf %78, %77 : vector<16x128xf32>
    %80 = arith.divf %78, %79 : vector<16x128xf32>
    %81 = vector.extract_strided_slice %68 {offsets = [0, 128], sizes = [16, 128], strides = [1, 1]} : vector<16x384xf32> to vector<16x128xf32>
    %82 = vector.extract_strided_slice %72 {offsets = [0, 128], sizes = [16, 128], strides = [1, 1]} : vector<16x384xf32> to vector<16x128xf32>
    %83 = arith.addf %81, %82 : vector<16x128xf32>
    %84 = arith.negf %83 : vector<16x128xf32>
    %85 = math.exp %84 : vector<16x128xf32>
    %cst_23 = arith.constant 1.000000e+00 : f32
    %86 = vector.broadcast %cst_23 : f32 to vector<16x128xf32>
    %87 = arith.addf %86, %85 : vector<16x128xf32>
    %88 = arith.divf %86, %87 : vector<16x128xf32>
    %89 = vector.extract_strided_slice %68 {offsets = [0, 256], sizes = [16, 128], strides = [1, 1]} : vector<16x384xf32> to vector<16x128xf32>
    %90 = vector.extract_strided_slice %72 {offsets = [0, 256], sizes = [16, 128], strides = [1, 1]} : vector<16x384xf32> to vector<16x128xf32>
    %91 = arith.mulf %80, %90 : vector<16x128xf32>
    %92 = arith.addf %89, %91 : vector<16x128xf32>
    %93 = math.tanh %92 : vector<16x128xf32>
    %cst_24 = arith.constant 1.000000e+00 : f32
    %94 = vector.broadcast %cst_24 : f32 to vector<16x128xf32>
    %95 = arith.subf %94, %88 : vector<16x128xf32>
    %96 = arith.mulf %95, %93 : vector<16x128xf32>
    %97 = arith.mulf %88, %66 : vector<16x128xf32>
    %98 = arith.addf %96, %97 : vector<16x128xf32>
    %c0_25 = arith.constant 0 : index
    %c3 = arith.constant 3 : index
    %c0_26 = arith.constant 0 : index
    %c0_27 = arith.constant 0 : index
    %99 = vector.load %arg2[%c0_25, %c3, %c0_26, %c0_27] : memref<1x8x16x384xf32, #tpu.memory_space<vmem>>, vector<1x1x16x384xf32>
    %100 = vector.shape_cast %99 : vector<1x1x16x384xf32> to vector<16x384xf32>
    %101 = arith.truncf %98 : vector<16x128xf32> to vector<16x128xbf16>
    %cst_28 = arith.constant dense<0.000000e+00> : vector<16x384xf32>
    %102 = tpu.matmul %101, %0, %cst_28 {dimension_numbers = #tpu.dot_dimension_numbers<[1], [0], [0], [1], [0, 0, 1, 1], [], []>} : vector<16x128xbf16>, vector<128x384xbf16>, vector<16x384xf32> -> vector<16x384xf32>
    %103 = vector.broadcast %1 : vector<1x384xf32> to vector<16x384xf32>
    %104 = arith.addf %102, %103 : vector<16x384xf32>
    %105 = vector.extract_strided_slice %100 {offsets = [0, 0], sizes = [16, 128], strides = [1, 1]} : vector<16x384xf32> to vector<16x128xf32>
    %106 = vector.extract_strided_slice %104 {offsets = [0, 0], sizes = [16, 128], strides = [1, 1]} : vector<16x384xf32> to vector<16x128xf32>
    %107 = arith.addf %105, %106 : vector<16x128xf32>
    %108 = arith.negf %107 : vector<16x128xf32>
    %109 = math.exp %108 : vector<16x128xf32>
    %cst_29 = arith.constant 1.000000e+00 : f32
    %110 = vector.broadcast %cst_29 : f32 to vector<16x128xf32>
    %111 = arith.addf %110, %109 : vector<16x128xf32>
    %112 = arith.divf %110, %111 : vector<16x128xf32>
    %113 = vector.extract_strided_slice %100 {offsets = [0, 128], sizes = [16, 128], strides = [1, 1]} : vector<16x384xf32> to vector<16x128xf32>
    %114 = vector.extract_strided_slice %104 {offsets = [0, 128], sizes = [16, 128], strides = [1, 1]} : vector<16x384xf32> to vector<16x128xf32>
    %115 = arith.addf %113, %114 : vector<16x128xf32>
    %116 = arith.negf %115 : vector<16x128xf32>
    %117 = math.exp %116 : vector<16x128xf32>
    %cst_30 = arith.constant 1.000000e+00 : f32
    %118 = vector.broadcast %cst_30 : f32 to vector<16x128xf32>
    %119 = arith.addf %118, %117 : vector<16x128xf32>
    %120 = arith.divf %118, %119 : vector<16x128xf32>
    %121 = vector.extract_strided_slice %100 {offsets = [0, 256], sizes = [16, 128], strides = [1, 1]} : vector<16x384xf32> to vector<16x128xf32>
    %122 = vector.extract_strided_slice %104 {offsets = [0, 256], sizes = [16, 128], strides = [1, 1]} : vector<16x384xf32> to vector<16x128xf32>
    %123 = arith.mulf %112, %122 : vector<16x128xf32>
    %124 = arith.addf %121, %123 : vector<16x128xf32>
    %125 = math.tanh %124 : vector<16x128xf32>
    %cst_31 = arith.constant 1.000000e+00 : f32
    %126 = vector.broadcast %cst_31 : f32 to vector<16x128xf32>
    %127 = arith.subf %126, %120 : vector<16x128xf32>
    %128 = arith.mulf %127, %125 : vector<16x128xf32>
    %129 = arith.mulf %120, %98 : vector<16x128xf32>
    %130 = arith.addf %128, %129 : vector<16x128xf32>
    %c0_32 = arith.constant 0 : index
    %c4 = arith.constant 4 : index
    %c0_33 = arith.constant 0 : index
    %c0_34 = arith.constant 0 : index
    %131 = vector.load %arg2[%c0_32, %c4, %c0_33, %c0_34] : memref<1x8x16x384xf32, #tpu.memory_space<vmem>>, vector<1x1x16x384xf32>
    %132 = vector.shape_cast %131 : vector<1x1x16x384xf32> to vector<16x384xf32>
    %133 = arith.truncf %130 : vector<16x128xf32> to vector<16x128xbf16>
    %cst_35 = arith.constant dense<0.000000e+00> : vector<16x384xf32>
    %134 = tpu.matmul %133, %0, %cst_35 {dimension_numbers = #tpu.dot_dimension_numbers<[1], [0], [0], [1], [0, 0, 1, 1], [], []>} : vector<16x128xbf16>, vector<128x384xbf16>, vector<16x384xf32> -> vector<16x384xf32>
    %135 = vector.broadcast %1 : vector<1x384xf32> to vector<16x384xf32>
    %136 = arith.addf %134, %135 : vector<16x384xf32>
    %137 = vector.extract_strided_slice %132 {offsets = [0, 0], sizes = [16, 128], strides = [1, 1]} : vector<16x384xf32> to vector<16x128xf32>
    %138 = vector.extract_strided_slice %136 {offsets = [0, 0], sizes = [16, 128], strides = [1, 1]} : vector<16x384xf32> to vector<16x128xf32>
    %139 = arith.addf %137, %138 : vector<16x128xf32>
    %140 = arith.negf %139 : vector<16x128xf32>
    %141 = math.exp %140 : vector<16x128xf32>
    %cst_36 = arith.constant 1.000000e+00 : f32
    %142 = vector.broadcast %cst_36 : f32 to vector<16x128xf32>
    %143 = arith.addf %142, %141 : vector<16x128xf32>
    %144 = arith.divf %142, %143 : vector<16x128xf32>
    %145 = vector.extract_strided_slice %132 {offsets = [0, 128], sizes = [16, 128], strides = [1, 1]} : vector<16x384xf32> to vector<16x128xf32>
    %146 = vector.extract_strided_slice %136 {offsets = [0, 128], sizes = [16, 128], strides = [1, 1]} : vector<16x384xf32> to vector<16x128xf32>
    %147 = arith.addf %145, %146 : vector<16x128xf32>
    %148 = arith.negf %147 : vector<16x128xf32>
    %149 = math.exp %148 : vector<16x128xf32>
    %cst_37 = arith.constant 1.000000e+00 : f32
    %150 = vector.broadcast %cst_37 : f32 to vector<16x128xf32>
    %151 = arith.addf %150, %149 : vector<16x128xf32>
    %152 = arith.divf %150, %151 : vector<16x128xf32>
    %153 = vector.extract_strided_slice %132 {offsets = [0, 256], sizes = [16, 128], strides = [1, 1]} : vector<16x384xf32> to vector<16x128xf32>
    %154 = vector.extract_strided_slice %136 {offsets = [0, 256], sizes = [16, 128], strides = [1, 1]} : vector<16x384xf32> to vector<16x128xf32>
    %155 = arith.mulf %144, %154 : vector<16x128xf32>
    %156 = arith.addf %153, %155 : vector<16x128xf32>
    %157 = math.tanh %156 : vector<16x128xf32>
    %cst_38 = arith.constant 1.000000e+00 : f32
    %158 = vector.broadcast %cst_38 : f32 to vector<16x128xf32>
    %159 = arith.subf %158, %152 : vector<16x128xf32>
    %160 = arith.mulf %159, %157 : vector<16x128xf32>
    %161 = arith.mulf %152, %130 : vector<16x128xf32>
    %162 = arith.addf %160, %161 : vector<16x128xf32>
    %c0_39 = arith.constant 0 : index
    %c5 = arith.constant 5 : index
    %c0_40 = arith.constant 0 : index
    %c0_41 = arith.constant 0 : index
    %163 = vector.load %arg2[%c0_39, %c5, %c0_40, %c0_41] : memref<1x8x16x384xf32, #tpu.memory_space<vmem>>, vector<1x1x16x384xf32>
    %164 = vector.shape_cast %163 : vector<1x1x16x384xf32> to vector<16x384xf32>
    %165 = arith.truncf %162 : vector<16x128xf32> to vector<16x128xbf16>
    %cst_42 = arith.constant dense<0.000000e+00> : vector<16x384xf32>
    %166 = tpu.matmul %165, %0, %cst_42 {dimension_numbers = #tpu.dot_dimension_numbers<[1], [0], [0], [1], [0, 0, 1, 1], [], []>} : vector<16x128xbf16>, vector<128x384xbf16>, vector<16x384xf32> -> vector<16x384xf32>
    %167 = vector.broadcast %1 : vector<1x384xf32> to vector<16x384xf32>
    %168 = arith.addf %166, %167 : vector<16x384xf32>
    %169 = vector.extract_strided_slice %164 {offsets = [0, 0], sizes = [16, 128], strides = [1, 1]} : vector<16x384xf32> to vector<16x128xf32>
    %170 = vector.extract_strided_slice %168 {offsets = [0, 0], sizes = [16, 128], strides = [1, 1]} : vector<16x384xf32> to vector<16x128xf32>
    %171 = arith.addf %169, %170 : vector<16x128xf32>
    %172 = arith.negf %171 : vector<16x128xf32>
    %173 = math.exp %172 : vector<16x128xf32>
    %cst_43 = arith.constant 1.000000e+00 : f32
    %174 = vector.broadcast %cst_43 : f32 to vector<16x128xf32>
    %175 = arith.addf %174, %173 : vector<16x128xf32>
    %176 = arith.divf %174, %175 : vector<16x128xf32>
    %177 = vector.extract_strided_slice %164 {offsets = [0, 128], sizes = [16, 128], strides = [1, 1]} : vector<16x384xf32> to vector<16x128xf32>
    %178 = vector.extract_strided_slice %168 {offsets = [0, 128], sizes = [16, 128], strides = [1, 1]} : vector<16x384xf32> to vector<16x128xf32>
    %179 = arith.addf %177, %178 : vector<16x128xf32>
    %180 = arith.negf %179 : vector<16x128xf32>
    %181 = math.exp %180 : vector<16x128xf32>
    %cst_44 = arith.constant 1.000000e+00 : f32
    %182 = vector.broadcast %cst_44 : f32 to vector<16x128xf32>
    %183 = arith.addf %182, %181 : vector<16x128xf32>
    %184 = arith.divf %182, %183 : vector<16x128xf32>
    %185 = vector.extract_strided_slice %164 {offsets = [0, 256], sizes = [16, 128], strides = [1, 1]} : vector<16x384xf32> to vector<16x128xf32>
    %186 = vector.extract_strided_slice %168 {offsets = [0, 256], sizes = [16, 128], strides = [1, 1]} : vector<16x384xf32> to vector<16x128xf32>
    %187 = arith.mulf %176, %186 : vector<16x128xf32>
    %188 = arith.addf %185, %187 : vector<16x128xf32>
    %189 = math.tanh %188 : vector<16x128xf32>
    %cst_45 = arith.constant 1.000000e+00 : f32
    %190 = vector.broadcast %cst_45 : f32 to vector<16x128xf32>
    %191 = arith.subf %190, %184 : vector<16x128xf32>
    %192 = arith.mulf %191, %189 : vector<16x128xf32>
    %193 = arith.mulf %184, %162 : vector<16x128xf32>
    %194 = arith.addf %192, %193 : vector<16x128xf32>
    %c0_46 = arith.constant 0 : index
    %c6 = arith.constant 6 : index
    %c0_47 = arith.constant 0 : index
    %c0_48 = arith.constant 0 : index
    %195 = vector.load %arg2[%c0_46, %c6, %c0_47, %c0_48] : memref<1x8x16x384xf32, #tpu.memory_space<vmem>>, vector<1x1x16x384xf32>
    %196 = vector.shape_cast %195 : vector<1x1x16x384xf32> to vector<16x384xf32>
    %197 = arith.truncf %194 : vector<16x128xf32> to vector<16x128xbf16>
    %cst_49 = arith.constant dense<0.000000e+00> : vector<16x384xf32>
    %198 = tpu.matmul %197, %0, %cst_49 {dimension_numbers = #tpu.dot_dimension_numbers<[1], [0], [0], [1], [0, 0, 1, 1], [], []>} : vector<16x128xbf16>, vector<128x384xbf16>, vector<16x384xf32> -> vector<16x384xf32>
    %199 = vector.broadcast %1 : vector<1x384xf32> to vector<16x384xf32>
    %200 = arith.addf %198, %199 : vector<16x384xf32>
    %201 = vector.extract_strided_slice %196 {offsets = [0, 0], sizes = [16, 128], strides = [1, 1]} : vector<16x384xf32> to vector<16x128xf32>
    %202 = vector.extract_strided_slice %200 {offsets = [0, 0], sizes = [16, 128], strides = [1, 1]} : vector<16x384xf32> to vector<16x128xf32>
    %203 = arith.addf %201, %202 : vector<16x128xf32>
    %204 = arith.negf %203 : vector<16x128xf32>
    %205 = math.exp %204 : vector<16x128xf32>
    %cst_50 = arith.constant 1.000000e+00 : f32
    %206 = vector.broadcast %cst_50 : f32 to vector<16x128xf32>
    %207 = arith.addf %206, %205 : vector<16x128xf32>
    %208 = arith.divf %206, %207 : vector<16x128xf32>
    %209 = vector.extract_strided_slice %196 {offsets = [0, 128], sizes = [16, 128], strides = [1, 1]} : vector<16x384xf32> to vector<16x128xf32>
    %210 = vector.extract_strided_slice %200 {offsets = [0, 128], sizes = [16, 128], strides = [1, 1]} : vector<16x384xf32> to vector<16x128xf32>
    %211 = arith.addf %209, %210 : vector<16x128xf32>
    %212 = arith.negf %211 : vector<16x128xf32>
    %213 = math.exp %212 : vector<16x128xf32>
    %cst_51 = arith.constant 1.000000e+00 : f32
    %214 = vector.broadcast %cst_51 : f32 to vector<16x128xf32>
    %215 = arith.addf %214, %213 : vector<16x128xf32>
    %216 = arith.divf %214, %215 : vector<16x128xf32>
    %217 = vector.extract_strided_slice %196 {offsets = [0, 256], sizes = [16, 128], strides = [1, 1]} : vector<16x384xf32> to vector<16x128xf32>
    %218 = vector.extract_strided_slice %200 {offsets = [0, 256], sizes = [16, 128], strides = [1, 1]} : vector<16x384xf32> to vector<16x128xf32>
    %219 = arith.mulf %208, %218 : vector<16x128xf32>
    %220 = arith.addf %217, %219 : vector<16x128xf32>
    %221 = math.tanh %220 : vector<16x128xf32>
    %cst_52 = arith.constant 1.000000e+00 : f32
    %222 = vector.broadcast %cst_52 : f32 to vector<16x128xf32>
    %223 = arith.subf %222, %216 : vector<16x128xf32>
    %224 = arith.mulf %223, %221 : vector<16x128xf32>
    %225 = arith.mulf %216, %194 : vector<16x128xf32>
    %226 = arith.addf %224, %225 : vector<16x128xf32>
    %c0_53 = arith.constant 0 : index
    %c7 = arith.constant 7 : index
    %c0_54 = arith.constant 0 : index
    %c0_55 = arith.constant 0 : index
    %227 = vector.load %arg2[%c0_53, %c7, %c0_54, %c0_55] : memref<1x8x16x384xf32, #tpu.memory_space<vmem>>, vector<1x1x16x384xf32>
    %228 = vector.shape_cast %227 : vector<1x1x16x384xf32> to vector<16x384xf32>
    %229 = arith.truncf %226 : vector<16x128xf32> to vector<16x128xbf16>
    %cst_56 = arith.constant dense<0.000000e+00> : vector<16x384xf32>
    %230 = tpu.matmul %229, %0, %cst_56 {dimension_numbers = #tpu.dot_dimension_numbers<[1], [0], [0], [1], [0, 0, 1, 1], [], []>} : vector<16x128xbf16>, vector<128x384xbf16>, vector<16x384xf32> -> vector<16x384xf32>
    %231 = vector.broadcast %1 : vector<1x384xf32> to vector<16x384xf32>
    %232 = arith.addf %230, %231 : vector<16x384xf32>
    %233 = vector.extract_strided_slice %228 {offsets = [0, 0], sizes = [16, 128], strides = [1, 1]} : vector<16x384xf32> to vector<16x128xf32>
    %234 = vector.extract_strided_slice %232 {offsets = [0, 0], sizes = [16, 128], strides = [1, 1]} : vector<16x384xf32> to vector<16x128xf32>
    %235 = arith.addf %233, %234 : vector<16x128xf32>
    %236 = arith.negf %235 : vector<16x128xf32>
    %237 = math.exp %236 : vector<16x128xf32>
    %cst_57 = arith.constant 1.000000e+00 : f32
    %238 = vector.broadcast %cst_57 : f32 to vector<16x128xf32>
    %239 = arith.addf %238, %237 : vector<16x128xf32>
    %240 = arith.divf %238, %239 : vector<16x128xf32>
    %241 = vector.extract_strided_slice %228 {offsets = [0, 128], sizes = [16, 128], strides = [1, 1]} : vector<16x384xf32> to vector<16x128xf32>
    %242 = vector.extract_strided_slice %232 {offsets = [0, 128], sizes = [16, 128], strides = [1, 1]} : vector<16x384xf32> to vector<16x128xf32>
    %243 = arith.addf %241, %242 : vector<16x128xf32>
    %244 = arith.negf %243 : vector<16x128xf32>
    %245 = math.exp %244 : vector<16x128xf32>
    %cst_58 = arith.constant 1.000000e+00 : f32
    %246 = vector.broadcast %cst_58 : f32 to vector<16x128xf32>
    %247 = arith.addf %246, %245 : vector<16x128xf32>
    %248 = arith.divf %246, %247 : vector<16x128xf32>
    %249 = vector.extract_strided_slice %228 {offsets = [0, 256], sizes = [16, 128], strides = [1, 1]} : vector<16x384xf32> to vector<16x128xf32>
    %250 = vector.extract_strided_slice %232 {offsets = [0, 256], sizes = [16, 128], strides = [1, 1]} : vector<16x384xf32> to vector<16x128xf32>
    %251 = arith.mulf %240, %250 : vector<16x128xf32>
    %252 = arith.addf %249, %251 : vector<16x128xf32>
    %253 = math.tanh %252 : vector<16x128xf32>
    %cst_59 = arith.constant 1.000000e+00 : f32
    %254 = vector.broadcast %cst_59 : f32 to vector<16x128xf32>
    %255 = arith.subf %254, %248 : vector<16x128xf32>
    %256 = arith.mulf %255, %253 : vector<16x128xf32>
    %257 = arith.mulf %248, %226 : vector<16x128xf32>
    %258 = arith.addf %256, %257 : vector<16x128xf32>
    %c0_60 = arith.constant 0 : index
    %c0_61 = arith.constant 0 : index
    %c0_62 = arith.constant 0 : index
    %259 = vector.load %arg5[%c0_60, %c0_61, %c0_62] : memref<1x16x128xf32, #tpu.memory_space<vmem>>, vector<1x16x128xf32>
    %260 = vector.shape_cast %259 : vector<1x16x128xf32> to vector<16x128xf32>
    %261 = vector.shape_cast %258 : vector<16x128xf32> to vector<1x16x128xf32>
    tpu.vector_store %arg5[%c0_60, %c0_61, %c0_62], %261 {strides = array<i32>} : memref<1x16x128xf32, #tpu.memory_space<vmem>>, vector<1x16x128xf32>,
    return
  }
  func.func @transform_0(%arg0: i32, %arg1: i32) -> (i32, i32, i32, i32) {
    %c0_i32 = arith.constant 0 : i32
    %c0_i32_0 = arith.constant 0 : i32
    %c0_i32_1 = arith.constant 0 : i32
    return %arg0, %c0_i32, %arg1, %c0_i32_0 : i32, i32, i32, i32
  }
  func.func @transform_1(%arg0: i32, %arg1: i32) -> (i32, i32) {
    %c0_i32 = arith.constant 0 : i32
    %c0_i32_0 = arith.constant 0 : i32
    %c0_i32_1 = arith.constant 0 : i32
    return %c0_i32, %c0_i32_0 : i32, i32
  }
  func.func @transform_2(%arg0: i32, %arg1: i32) -> (i32, i32) {
    %c0_i32 = arith.constant 0 : i32
    %c0_i32_0 = arith.constant 0 : i32
    %c0_i32_1 = arith.constant 0 : i32
    return %c0_i32, %c0_i32_0 : i32, i32
  }
  func.func @transform_3(%arg0: i32, %arg1: i32) -> (i32, i32, i32) {
    %c0_i32 = arith.constant 0 : i32
    %c0_i32_0 = arith.constant 0 : i32
    return %arg0, %arg1, %c0_i32 : i32, i32, i32
  }
}

module attributes {stable_mosaic.version = 11 : i64} {
  func.func @_space_kernel(%arg0: i32, %arg1: memref<1x16x128xbf16, #tpu.memory_space<vmem>>, %arg2: memref<16x16xbf16, #tpu.memory_space<vmem>>, %arg3: memref<16x16xbf16, #tpu.memory_space<vmem>>, %arg4: memref<640x128xbf16, #tpu.memory_space<vmem>>, %arg5: memref<1x128xf32, #tpu.memory_space<vmem>>, %arg6: memref<128x128xbf16, #tpu.memory_space<vmem>>, %arg7: memref<1x128xf32, #tpu.memory_space<vmem>>, %arg8: memref<1x16x128xf32, #tpu.memory_space<vmem>>) attributes {dimension_semantics = [#tpu.dimension_semantics<parallel>], iteration_bounds = array<i64: 2>, scalar_prefetch = 0 : i64, scratch_operands = 0 : i64, tpu.core_type = #tpu.core_type<tc>, window_params = [{transform_indices = @transform_0, window_bounds = array<i64: 1, 16, 128>}, {pipeline_mode = #tpu.pipeline_mode<synchronous>, transform_indices = @transform_1, window_bounds = array<i64: 16, 16>}, {pipeline_mode = #tpu.pipeline_mode<synchronous>, transform_indices = @transform_2, window_bounds = array<i64: 16, 16>}, {pipeline_mode = #tpu.pipeline_mode<synchronous>, transform_indices = @transform_3, window_bounds = array<i64: 640, 128>}, {pipeline_mode = #tpu.pipeline_mode<synchronous>, transform_indices = @transform_4, window_bounds = array<i64: 1, 128>}, {pipeline_mode = #tpu.pipeline_mode<synchronous>, transform_indices = @transform_5, window_bounds = array<i64: 128, 128>}, {pipeline_mode = #tpu.pipeline_mode<synchronous>, transform_indices = @transform_6, window_bounds = array<i64: 1, 128>}, {transform_indices = @transform_7, window_bounds = array<i64: 1, 16, 128>}]} {
    %c0 = arith.constant 0 : index
    %c0_0 = arith.constant 0 : index
    %c0_1 = arith.constant 0 : index
    %0 = vector.load %arg1[%c0, %c0_0, %c0_1] : memref<1x16x128xbf16, #tpu.memory_space<vmem>>, vector<1x16x128xbf16>
    %1 = vector.shape_cast %0 : vector<1x16x128xbf16> to vector<16x128xbf16>
    %c0_2 = arith.constant 0 : index
    %c0_3 = arith.constant 0 : index
    %2 = vector.load %arg2[%c0_2, %c0_3] : memref<16x16xbf16, #tpu.memory_space<vmem>>, vector<16x16xbf16>
    %cst = arith.constant dense<0.000000e+00> : vector<16x128xf32>
    %3 = tpu.matmul %2, %1, %cst {dimension_numbers = #tpu.dot_dimension_numbers<[1], [0], [0], [1], [0, 0, 1, 1], [], []>} : vector<16x16xbf16>, vector<16x128xbf16>, vector<16x128xf32> -> vector<16x128xf32>
    %4 = arith.truncf %3 : vector<16x128xf32> to vector<16x128xbf16>
    %cst_4 = arith.constant dense<0.000000e+00> : vector<16x128xf32>
    %5 = tpu.matmul %2, %4, %cst_4 {dimension_numbers = #tpu.dot_dimension_numbers<[1], [0], [0], [1], [0, 0, 1, 1], [], []>} : vector<16x16xbf16>, vector<16x128xbf16>, vector<16x128xf32> -> vector<16x128xf32>
    %6 = arith.truncf %5 : vector<16x128xf32> to vector<16x128xbf16>
    %c0_5 = arith.constant 0 : index
    %c0_6 = arith.constant 0 : index
    %7 = vector.load %arg3[%c0_5, %c0_6] : memref<16x16xbf16, #tpu.memory_space<vmem>>, vector<16x16xbf16>
    %cst_7 = arith.constant dense<0.000000e+00> : vector<16x128xf32>
    %8 = tpu.matmul %7, %1, %cst_7 {dimension_numbers = #tpu.dot_dimension_numbers<[1], [0], [0], [1], [0, 0, 1, 1], [], []>} : vector<16x16xbf16>, vector<16x128xbf16>, vector<16x128xf32> -> vector<16x128xf32>
    %9 = arith.truncf %8 : vector<16x128xf32> to vector<16x128xbf16>
    %cst_8 = arith.constant dense<0.000000e+00> : vector<16x128xf32>
    %10 = tpu.matmul %7, %9, %cst_8 {dimension_numbers = #tpu.dot_dimension_numbers<[1], [0], [0], [1], [0, 0, 1, 1], [], []>} : vector<16x16xbf16>, vector<16x128xbf16>, vector<16x128xf32> -> vector<16x128xf32>
    %11 = arith.truncf %10 : vector<16x128xf32> to vector<16x128xbf16>
    %12 = tpu.concatenate %1, %4, %6, %9, %11 in 1 : vector<16x128xbf16>, vector<16x128xbf16>, vector<16x128xbf16>, vector<16x128xbf16>, vector<16x128xbf16> -> vector<16x640xbf16>
    %c0_9 = arith.constant 0 : index
    %c0_10 = arith.constant 0 : index
    %13 = vector.load %arg4[%c0_9, %c0_10] : memref<640x128xbf16, #tpu.memory_space<vmem>>, vector<640x128xbf16>
    %cst_11 = arith.constant dense<0.000000e+00> : vector<16x128xf32>
    %14 = tpu.matmul %12, %13, %cst_11 {dimension_numbers = #tpu.dot_dimension_numbers<[1], [0], [0], [1], [0, 0, 1, 1], [], []>} : vector<16x640xbf16>, vector<640x128xbf16>, vector<16x128xf32> -> vector<16x128xf32>
    %c0_12 = arith.constant 0 : index
    %c0_13 = arith.constant 0 : index
    %15 = vector.load %arg5[%c0_12, %c0_13] : memref<1x128xf32, #tpu.memory_space<vmem>>, vector<1x128xf32>
    %16 = vector.broadcast %15 : vector<1x128xf32> to vector<16x128xf32>
    %17 = arith.addf %14, %16 : vector<16x128xf32>
    %18 = arith.truncf %17 : vector<16x128xf32> to vector<16x128xbf16>
    %c0_14 = arith.constant 0 : index
    %c0_15 = arith.constant 0 : index
    %19 = vector.load %arg6[%c0_14, %c0_15] : memref<128x128xbf16, #tpu.memory_space<vmem>>, vector<128x128xbf16>
    %cst_16 = arith.constant dense<0.000000e+00> : vector<16x128xf32>
    %20 = tpu.matmul %18, %19, %cst_16 {dimension_numbers = #tpu.dot_dimension_numbers<[1], [0], [0], [1], [0, 0, 1, 1], [], []>} : vector<16x128xbf16>, vector<128x128xbf16>, vector<16x128xf32> -> vector<16x128xf32>
    %c0_17 = arith.constant 0 : index
    %c0_18 = arith.constant 0 : index
    %21 = vector.load %arg7[%c0_17, %c0_18] : memref<1x128xf32, #tpu.memory_space<vmem>>, vector<1x128xf32>
    %22 = vector.broadcast %21 : vector<1x128xf32> to vector<16x128xf32>
    %23 = arith.addf %20, %22 : vector<16x128xf32>
    %c0_19 = arith.constant 0 : index
    %c0_20 = arith.constant 0 : index
    %c0_21 = arith.constant 0 : index
    %24 = vector.load %arg8[%c0_19, %c0_20, %c0_21] : memref<1x16x128xf32, #tpu.memory_space<vmem>>, vector<1x16x128xf32>
    %25 = vector.shape_cast %24 : vector<1x16x128xf32> to vector<16x128xf32>
    %26 = vector.shape_cast %23 : vector<16x128xf32> to vector<1x16x128xf32>
    tpu.vector_store %arg8[%c0_19, %c0_20, %c0_21], %26 {strides = array<i32>} : memref<1x16x128xf32, #tpu.memory_space<vmem>>, vector<1x16x128xf32>,
    return
  }
  func.func @transform_0(%arg0: i32) -> (i32, i32, i32) {
    %c0_i32 = arith.constant 0 : i32
    %c0_i32_0 = arith.constant 0 : i32
    %c0_i32_1 = arith.constant 0 : i32
    return %arg0, %c0_i32, %c0_i32_0 : i32, i32, i32
  }
  func.func @transform_1(%arg0: i32) -> (i32, i32) {
    %c0_i32 = arith.constant 0 : i32
    %c0_i32_0 = arith.constant 0 : i32
    %c0_i32_1 = arith.constant 0 : i32
    return %c0_i32, %c0_i32_0 : i32, i32
  }
  func.func @transform_2(%arg0: i32) -> (i32, i32) {
    %c0_i32 = arith.constant 0 : i32
    %c0_i32_0 = arith.constant 0 : i32
    %c0_i32_1 = arith.constant 0 : i32
    return %c0_i32, %c0_i32_0 : i32, i32
  }
  func.func @transform_3(%arg0: i32) -> (i32, i32) {
    %c0_i32 = arith.constant 0 : i32
    %c0_i32_0 = arith.constant 0 : i32
    %c0_i32_1 = arith.constant 0 : i32
    return %c0_i32, %c0_i32_0 : i32, i32
  }
  func.func @transform_4(%arg0: i32) -> (i32, i32) {
    %c0_i32 = arith.constant 0 : i32
    %c0_i32_0 = arith.constant 0 : i32
    %c0_i32_1 = arith.constant 0 : i32
    return %c0_i32, %c0_i32_0 : i32, i32
  }
  func.func @transform_5(%arg0: i32) -> (i32, i32) {
    %c0_i32 = arith.constant 0 : i32
    %c0_i32_0 = arith.constant 0 : i32
    %c0_i32_1 = arith.constant 0 : i32
    return %c0_i32, %c0_i32_0 : i32, i32
  }
  func.func @transform_6(%arg0: i32) -> (i32, i32) {
    %c0_i32 = arith.constant 0 : i32
    %c0_i32_0 = arith.constant 0 : i32
    %c0_i32_1 = arith.constant 0 : i32
    return %c0_i32, %c0_i32_0 : i32, i32
  }
  func.func @transform_7(%arg0: i32) -> (i32, i32, i32) {
    %c0_i32 = arith.constant 0 : i32
    %c0_i32_0 = arith.constant 0 : i32
    %c0_i32_1 = arith.constant 0 : i32
    return %arg0, %c0_i32, %c0_i32_0 : i32, i32, i32
  }
}

</mosaic_0001>

<bundles_post_ra>
// kernel: time_then_space_forward.2
= control target key start
LH: loop header
LB: loop body
LE: loop exit
PB: predicated region body
PF: predicated region fallthrough
CT: control target
= control target key end

     0   :  { %s2185_s12 = smov 0   ;;  %s2187_s13 = smov 0   ;;  %s2911_s0 = inlined_call_operand.vmem [shape: f32[2,8,16,384], index: 0, kind: input, shape index: {}]   ;;  %s2912_s1 = inlined_call_operand.vmem [shape: bf16[128,384], index: 1, kind: input, shape index: {}]   ;;  %s2913_s2 = inlined_call_operand.vmem [shape: f32[1,384], index: 2, kind: input, shape index: {}]   ;;  %s2914_s3 = inlined_call_operand.vmem [shape: f32[2,16,128], index: 3, kind: output, shape index: {}]  }
   0x1   :  { %s2189_s14 = smov 0  }
   0x2 LB: > { %s25_s15 = sadd.s32 1, %s2156_s13  ;;  %p1557_p0 = scmp.ge.s32.totalorder %s2160_s14, 1  ;;  %s2160_s14 = sphi %s2189_s14, %s13_s14   ;;  %s2156_s13 = sphi %s2187_s13, %s2916_s13   ;;  %s2152_s12 = sphi %s2185_s12, %s2915_s12  }
   0x3   : > { %p27_p1 = scmp.ge.s32.totalorder %s25_s15, 2  ;;  %p159_p2 = scmp.lt.s32.totalorder %s2160_s14, 3 }
   0x5   : > { %s2918_s15 = smov (%p27_p1, %s25_s15), 0  ;;  %p160_p3 = pnand %p1557_p0, %p159_p2 }
   0x6   : > { %v2208_v0 = vld [vmem:[%s2912_s1 + $0x4] ss:$12 sps:$4 sm:$0xff] (!%p160_p3)   ;;  %v2213_v1 = vld [vmem:[%s2912_s1] ss:$12 sps:$4 sm:$0xff] (!%p160_p3)   ;;  %v2162_v2 = vmov (!%p160_p3), 0.0   ;;  %v2163_v3 = vmov (!%p160_p3), 0   ;;  %v254_v26 = vlaneseq (!%p160_p3) }
   0x7   : > { %163 = sbr.rel (%p160_p3) target bundleno = 2159 (0x86f), region = 32  ;;  %1734 = vmatprep.subr.bf16.mxu1 (!%p160_p3), %v2162_v2  ;;  %429 = vmatprep.mubr.bf16.mxu0 (!%p160_p3), %v2163_v3  ;;  %v2221_v4 = vld [vmem:[%s2912_s1 + $0x1c] ss:$12 sps:$4 sm:$0xff] (!%p160_p3)   ;;  %vm2164_vm0 = vmmov (!%p160_p3), 0   ;;  %v2229_v5 = vld [vmem:[%s2912_s1 + $0x18] ss:$12 sps:$4 sm:$0xff] (!%p160_p3)  }
   0x8   : > { %397 = vmatprep.subr.bf16.mxu0 (!%p160_p3), %v2208_v0  ;;  %1750 = vmatprep.mubr.msk.bf16.mxu1 (!%p160_p3), %vm2164_vm0, %v2162_v2  ;;  %v2235_v6 = vld [vmem:[%s2912_s1 + $0x34] ss:$12 sps:$4 sm:$0xff] (!%p160_p3)   ;;  %v2241_v7 = vld [vmem:[%s2912_s1 + $0x30] ss:$12 sps:$4 sm:$0xff] (!%p160_p3)   ;;  %v2247_v8 = vld [vmem:[%s2912_s1 + $0x4c] ss:$12 sps:$4 sm:$0xff] (!%p160_p3)  }
   0x9   : > { %398 = vmatpush1.bf16.msra.mxu0 (!%p160_p3), %v2213_v1  ;;  %v2252_v9 = vld [vmem:[%s2912_s1 + $0x8] ss:$12 sps:$4 sm:$0xff] (!%p160_p3)   ;;  %v2263_v11 = vld [vmem:[%s2912_s1 + $0x64] ss:$12 sps:$4 sm:$0xff] (!%p160_p3)   ;;  %v2270_v12 = vld [vmem:[%s2912_s1 + $0x20] ss:$12 sps:$4 sm:$0xff] (!%p160_p3)  }
   0xa   : > { %399 = vmatprep.subr.bf16.mxu0 (!%p160_p3), %v2221_v4  ;;  %v2258_v10 = vld [vmem:[%s2912_s1 + $0x48] ss:$12 sps:$4 sm:$0xff] (!%p160_p3)   ;;  %1735 = vmatpush3.bf16.msra.mxu1 (!%p160_p3), %v2252_v9  ;;  %v2276_v13 = vld [vmem:[%s2912_s1 + $0x60] ss:$12 sps:$4 sm:$0xff] (!%p160_p3)   ;;  %v2289_v15 = vld [vmem:[%s2912_s1 + $0x38] ss:$12 sps:$4 sm:$0xff] (!%p160_p3)  }
   0xb   : > { %1736 = vmatprep.subr.bf16.mxu1 (!%p160_p3), %v2162_v2  ;;  %v2282_v14 = vld [vmem:[%s2912_s1 + $0x7c] ss:$12 sps:$4 sm:$0xff] (!%p160_p3)   ;;  %v2296_v16 = vld [vmem:[%s2912_s1 + $0x78] ss:$12 sps:$4 sm:$0xff] (!%p160_p3)   ;;  %v2302_v17 = vld [vmem:[%s2912_s1 + $0x94] ss:$12 sps:$4 sm:$0xff] (!%p160_p3)  }
   0xc   : > { %v2308_v18 = vld [vmem:[%s2912_s1 + $0x50] ss:$12 sps:$4 sm:$0xff] (!%p160_p3)   ;;  %v2321_v20 = vld [vmem:[%s2912_s1 + $0xac] ss:$12 sps:$4 sm:$0xff] (!%p160_p3)   ;;  %v2327_v21 = vld [vmem:[%s2912_s1 + $0x68] ss:$12 sps:$4 sm:$0xff] (!%p160_p3)  }
   0xd   : > { %400 = vmatpush1.bf16.msra.mxu0 (!%p160_p3), %v2229_v5  ;;  %v2315_v19 = vld [vmem:[%s2912_s1 + $0x90] ss:$12 sps:$4 sm:$0xff] (!%p160_p3)   ;;  %v2334_v22 = vld [vmem:[%s2912_s1 + $0xa8] ss:$12 sps:$4 sm:$0xff] (!%p160_p3)   ;;  %v2341_v23 = vld [vmem:[%s2912_s1 + $0x80] ss:$12 sps:$4 sm:$0xff] (!%p160_p3)  }
   0xe   : > { %401 = vmatprep.subr.bf16.mxu0 %v2235_v6  ;;  %1737 = vmatpush3.bf16.msra.mxu1 %v2270_v12  ;;  %v2349_v24 = vld [vmem:[%s2912_s1 + $0x98] ss:$12 sps:$4 sm:$0xff]   ;;  %v2360_v25 = vld [vmem:[%s2912_s1 + $0xb0] ss:$12 sps:$4 sm:$0xff]   ;;  %p193_p4 = scmp.lt.s32.totalorder %s2152_s12, 1  ;;  %v255_v27 = vshrl.u32 %v254_v26, 7 }
   0xf   : > { %1738 = vmatprep.subr.bf16.mxu1 %v2162_v2  ;;  %v246_v29 = vld [vmem:[%s2913_s2] sm:$0x7] }
  0x10   : > { %s2920_s12 = smov (!%p193_p4, %s2152_s12), 1  ;;  %v256_v28 = vsub.s32 0, %v255_v27  ;;  %v260_v30 = vsub.s32 1, %v255_v27  ;;  %v264_v60 = vsub.s32 2, %v255_v27 }
  0x11   : > { %402 = vmatpush1.bf16.msra.mxu0 %v2241_v7  ;;  %s1894_s18 = smul.u32 384, %s2920_s12  ;;  %s1661_s28 = sshll.u32 %s2920_s12, 4 }
  0x12   : > { %403 = vmatprep.subr.bf16.mxu0 %v2247_v8  ;;  %1739 = vmatpush3.bf16.msra.mxu1 %v2289_v15  ;;  %v2412_v31 = vrot.slane %v246_v29, %v256_v28  ;;  %v2414_v32 = vrot.slane %v246_v29, %v260_v30  ;;  %v2424_v62 = vrot.slane %v246_v29, %v264_v60 }
  0x13   : > { %1740 = vmatprep.subr.bf16.mxu1 %v2162_v2  ;;  %s2410_s23 = scalar_lea.vmem %s2911_s0, %s1894_s18 }
  0x14   : > { %v247_v33 = vld [vmem:[%s2410_s23] sm:$0xff]  ;;  %v250_v38 = vld [vmem:[%s2410_s23 + $0x18] sm:$0xff]  ;;  %v248_v41 = vld [vmem:[%s2410_s23 + $0x8] sm:$0xff] }
  0x15   : > { %404 = vmatpush1.bf16.msra.mxu0 %v2258_v10  ;;  %v251_v47 = vld [vmem:[%s2410_s23 + $0x20] sm:$0xff]  ;;  %v252_v27 = vld [vmem:[%s2410_s23 + $0x28] sm:$0xff] }
  0x16   : > { %405 = vmatprep.subr.bf16.mxu0 %v2263_v11  ;;  %1741 = vmatpush3.bf16.msra.mxu1 %v2308_v18 }
  0x17   : > { %1742 = vmatprep.subr.bf16.mxu1 %v2162_v2 }
  0x19   : > { %406 = vmatpush1.bf16.msra.mxu0 %v2276_v13 }
  0x1a   : > { %407 = vmatprep.subr.bf16.mxu0 %v2282_v14  ;;  %1743 = vmatpush3.bf16.msra.mxu1 %v2327_v21 }
  0x1b   : > { %1744 = vmatprep.subr.bf16.mxu1 %v2162_v2 }
  0x1d   : > { %408 = vmatpush1.bf16.msra.mxu0 %v2296_v16 }
  0x1e   : > { %409 = vmatprep.subr.bf16.mxu0 %v2302_v17  ;;  %1745 = vmatpush3.bf16.msra.mxu1 %v2341_v23 }
  0x1f   : > { %1746 = vmatprep.subr.bf16.mxu1 %v2162_v2 }
  0x21   : > { %410 = vmatpush1.bf16.msra.mxu0 %v2315_v19 }
  0x22   : > { %411 = vmatprep.subr.bf16.mxu0 %v2321_v20  ;;  %1747 = vmatpush3.bf16.msra.mxu1 %v2349_v24 }
  0x23   : > { %1748 = vmatprep.subr.bf16.mxu1 %v2162_v2 }
  0x25   : > { %412 = vmatpush1.bf16.msra.mxu0 %v2334_v22 }
  0x26   : > { %531 = vmatprep.subr.bf16.mxu0 %v2208_v0  ;;  %1749 = vmatpush3.bf16.msra.mxu1 %v2360_v25 }
  0x27   : > { %1754 = vmatprep.subr.bf16.mxu1 %v2162_v2 }
  0x28   : > { %430 = vmatmul.mubr.bf16.vlgmr.msra.gmra.mrb[0].mxu0 %v2163_v3 }
  0x29   : > { %532 = vmatpush1.bf16.msra.mxu0 %v2213_v1  ;;  %563 = vmatprep.mubr.bf16.mxu0 %v2163_v3 }
  0x2a   : > { %533 = vmatprep.subr.bf16.mxu0 %v2221_v4  ;;  %1751 = vmatmul.mubr.bf16.vlgmr.msra.gmra.mrb[0].mxu1 %v2163_v3 }
  0x2b   : > { %1755 = vmatpush3.bf16.msra.mxu1 %v2252_v9  ;;  %1770 = vmatprep.mubr.msk.bf16.mxu1 %vm2164_vm0, %v2162_v2 }
  0x2c   : > { %1756 = vmatprep.subr.bf16.mxu1 %v2162_v2 }
  0x2d   : > { %534 = vmatpush1.bf16.msra.mxu0 %v2229_v5 }
  0x2e   : > { %535 = vmatprep.subr.bf16.mxu0 %v2235_v6 }
  0x2f   : > { %1757 = vmatpush3.bf16.msra.mxu1 %v2270_v12 }
  0x30   : > { %1758 = vmatprep.subr.bf16.mxu1 %v2162_v2 }
  0x31   : > { %536 = vmatpush1.bf16.msra.mxu0 %v2241_v7 }
  0x32   : > { %537 = vmatprep.subr.bf16.mxu0 %v2247_v8 }
  0x33   : > { %1759 = vmatpush3.bf16.msra.mxu1 %v2289_v15 }
  0x34   : > { %1760 = vmatprep.subr.bf16.mxu1 %v2162_v2 }
  0x35   : > { %538 = vmatpush1.bf16.msra.mxu0 %v2258_v10 }
  0x36   : > { %539 = vmatprep.subr.bf16.mxu0 %v2263_v11 }
  0x37   : > { %1761 = vmatpush3.bf16.msra.mxu1 %v2308_v18 }
  0x38   : > { %1762 = vmatprep.subr.bf16.mxu1 %v2162_v2 }
  0x39   : > { %540 = vmatpush1.bf16.msra.mxu0 %v2276_v13 }
  0x3a   : > { %541 = vmatprep.subr.bf16.mxu0 %v2282_v14 }
  0x3b   : > { %1763 = vmatpush3.bf16.msra.mxu1 %v2327_v21 }
  0x3c   : > { %1764 = vmatprep.subr.bf16.mxu1 %v2162_v2 }
  0x3d   : > { %542 = vmatpush1.bf16.msra.mxu0 %v2296_v16 }
  0x3e   : > { %543 = vmatprep.subr.bf16.mxu0 %v2302_v17 }
  0x3f   : > { %1765 = vmatpush3.bf16.msra.mxu1 %v2341_v23 }
  0x40   : > { %1766 = vmatprep.subr.bf16.mxu1 %v2162_v2 }
  0x41   : > { %544 = vmatpush1.bf16.msra.mxu0 %v2315_v19 }
  0x42   : > { %545 = vmatprep.subr.bf16.mxu0 %v2321_v20 }
  0x43   : > { %1767 = vmatpush3.bf16.msra.mxu1 %v2349_v24 }
  0x44   : > { %1768 = vmatprep.subr.bf16.mxu1 %v2162_v2 }
  0x45   : > { %546 = vmatpush1.bf16.msra.mxu0 %v2334_v22 }
  0x46   : > { %665 = vmatprep.subr.bf16.mxu0 %v2208_v0 }
  0x47   : > { %1769 = vmatpush3.bf16.msra.mxu1 %v2360_v25 }
  0x48   : > { %1774 = vmatprep.subr.bf16.mxu1 %v2162_v2 }
  0xfb   : > { %v431_v34 = vpop.f32.mrb[0].mxu0 }
  0xfc   : > { %v432_v35 = vadd.f32 %v431_v34, %v2412_v31  ;;  %v433_v36 = vpop.f32.mrb[1].mxu0 }
  0xfd   : > { %v434_v37 = vadd.f32 %v433_v36, %v2414_v32  ;;  %v435_v39 = vpop.f32.mrb[2].mxu0  ;;  %v474_v51 = vpop.f32.mrb[0].mxu1 }
  0xfe   : > { %v481_v40 = vadd.f32 %v432_v35, %v247_v33  ;;  %v436_v42 = vadd.f32 %v435_v39, %v2412_v31  ;;  %v437_v43 = vpop.f32.mrb[3].mxu0  ;;  %v1752_v53 = vpop.f32.mrb[1].mxu1  ;;  %v475_v30 = vadd.f32 %v474_v51, %v2424_v62  ;;  %v249_v35 = vld [vmem:[%s2410_s23 + $0x10] sm:$0xff] }
  0xff   : > { %v438_v44 = vadd.f32 %v437_v43, %v2414_v32  ;;  %v495_v48 = vadd.f32 %v434_v37, %v248_v41  ;;  %v477_v54 = vpop.f32.mrb[2].mxu1 }
 0x100   : > { %v1585_v45 = vmul.f32 -1.442695, %v481_v40  ;;  %v482_v46 = vadd.f32 %v436_v42, %v250_v38  ;;  %v1753_v56 = vpop.f32.mrb[3].mxu1  ;;  %v478_v37 = vadd.f32 %v477_v54, %v2424_v62  ;;  %v1589_v54 = vld [vmem:[%s2410_s23 + $0x30] sm:$0xff] }
 0x101   : > { %v496_v50 = vadd.f32 %v438_v44, %v251_v47  ;;  %v1587_v52 = vmul.f32 -1.442695, %v495_v48 }
 0x102   : > { %1954 = vpow2.f32 %v1585_v45  ;;  %v1586_v49 = vmul.f32 -1.442695, %v482_v46 }
 0x103   : > { %v1588_v55 = vmul.f32 -1.442695, %v496_v50 }
 0x104   : > { %1956 = vpow2.f32 %v1586_v49 }
 0x105   : > { %1958 = vpow2.f32 %v1587_v52 }
 0x106   : > { %1960 = vpow2.f32 %v1588_v55 }
 0x10c   : > { %v1955_v57 = vpop.eup %1954 }
 0x10d   : > { %v489_v58 = vadd.f32 1.0, %v1955_v57 }
 0x10e   : > { %v1957_v59 = vpop.eup %1956 }
 0x10f   : > { %1962 = vrcp.f32 %v489_v58  ;;  %v490_v61 = vadd.f32 1.0, %v1957_v59  ;;  %v1959_v63 = vpop.eup %1958 }
 0x110   : > { %v1961_v26 = vpop.eup %1960  ;;  %v503_v28 = vadd.f32 1.0, %v1959_v63 }
 0x111   : > { %1964 = vrcp.f32 %v490_v61  ;;  %v504_v33 = vadd.f32 1.0, %v1961_v26  ;;  %v1592_v61 = vld [vmem:[%s2410_s23 + $0x48] sm:$0xff] }
 0x112   : > { %1966 = vrcp.f32 %v503_v28 }
 0x113   : > { %1968 = vrcp.f32 %v504_v33 }
 0x119   : > { %v1963_v34 = vpop.eup %1962 }
 0x11a   : > { %v509_v36 = vmul.f32 %v1963_v34, %v475_v30  ;;  %v1590_v30 = vld [vmem:[%s2410_s23 + $0x38] sm:$0xff] }
 0x11b   : > { %v1965_v38 = vpop.eup %1964 }
 0x11c   : > { %v511_v39 = vadd.f32 %v509_v36, %v249_v35  ;;  %v510_v40 = vmul.f32 %v1965_v38, %v478_v37  ;;  %v1967_v41 = vpop.eup %1966 }
 0x11d   : > { %v1969_v42 = vpop.eup %1968  ;;  %v515_v43 = vsub.f32 1.0, %v1967_v41  ;;  %v519_v47 = vmul.f32 0.0, %v1967_v41 }
 0x11e   : > { %1970 = vtanh.f32 %v511_v39  ;;  %v512_v29 = vadd.f32 %v510_v40, %v252_v27  ;;  %v516_v45 = vsub.f32 1.0, %v1969_v42  ;;  %v520_v50 = vmul.f32 0.0, %v1969_v42  ;;  %v1593_v27 = vld [vmem:[%s2410_s23 + $0x50] sm:$0xff] }
 0x120   : > { %1972 = vtanh.f32 %v512_v29 }
 0x128   : > { %v1971_v44 = vpop.eup %1970 }
 0x129   : > { %v517_v46 = vmul.f32 %v1971_v44, %v515_v43 }
 0x12a   : > { %v1973_v48 = vpop.eup %1972 }
 0x12b   : > { %v518_v49 = vmul.f32 %v1973_v48, %v516_v45  ;;  %v2430_v51 = vadd.f32 %v519_v47, %v517_v46 }
 0x12d   : > { %v2432_v52 = vadd.f32 %v520_v50, %v518_v49 }
 0x12f   : > { %v530_v53 = vpack.c.bf16 %v2432_v52, %v2430_v51 }
 0x131   : > { %564 = vmatmul.mubr.bf16.vlgmr.msra.gmra.mrb[4].mxu0 %v530_v53  ;;  %1771 = vmatmul.mubr.bf16.vlgmr.msra.gmra.mrb[4].mxu1 %v530_v53 }
 0x132   : > { %666 = vmatpush1.bf16.msra.mxu0 %v2213_v1  ;;  %1775 = vmatpush3.bf16.msra.mxu1 %v2252_v9 }
 0x133   : > { %667 = vmatprep.subr.bf16.mxu0 %v2221_v4  ;;  %1776 = vmatprep.subr.bf16.mxu1 %v2162_v2 }
 0x134   : > { %697 = vmatprep.mubr.bf16.mxu0 %v2163_v3  ;;  %1790 = vmatprep.mubr.msk.bf16.mxu1 %vm2164_vm0, %v2162_v2 }
 0x136   : > { %668 = vmatpush1.bf16.msra.mxu0 %v2229_v5  ;;  %1777 = vmatpush3.bf16.msra.mxu1 %v2270_v12 }
 0x137   : > { %669 = vmatprep.subr.bf16.mxu0 %v2235_v6  ;;  %1778 = vmatprep.subr.bf16.mxu1 %v2162_v2 }
 0x13a   : > { %670 = vmatpush1.bf16.msra.mxu0 %v2241_v7  ;;  %1779 = vmatpush3.bf16.msra.mxu1 %v2289_v15 }
 0x13b   : > { %671 = vmatprep.subr.bf16.mxu0 %v2247_v8  ;;  %1780 = vmatprep.subr.bf16.mxu1 %v2162_v2 }
 0x13e   : > { %672 = vmatpush1.bf16.msra.mxu0 %v2258_v10  ;;  %1781 = vmatpush3.bf16.msra.mxu1 %v2308_v18 }
 0x13f   : > { %673 = vmatprep.subr.bf16.mxu0 %v2263_v11  ;;  %1782 = vmatprep.subr.bf16.mxu1 %v2162_v2 }
 0x142   : > { %674 = vmatpush1.bf16.msra.mxu0 %v2276_v13  ;;  %1783 = vmatpush3.bf16.msra.mxu1 %v2327_v21 }
 0x143   : > { %675 = vmatprep.subr.bf16.mxu0 %v2282_v14  ;;  %1784 = vmatprep.subr.bf16.mxu1 %v2162_v2 }
 0x146   : > { %676 = vmatpush1.bf16.msra.mxu0 %v2296_v16  ;;  %1785 = vmatpush3.bf16.msra.mxu1 %v2341_v23 }
 0x147   : > { %677 = vmatprep.subr.bf16.mxu0 %v2302_v17  ;;  %1786 = vmatprep.subr.bf16.mxu1 %v2162_v2 }
 0x14a   : > { %678 = vmatpush1.bf16.msra.mxu0 %v2315_v19  ;;  %1787 = vmatpush3.bf16.msra.mxu1 %v2349_v24 }
 0x14b   : > { %679 = vmatprep.subr.bf16.mxu0 %v2321_v20  ;;  %1788 = vmatprep.subr.bf16.mxu1 %v2162_v2 }
 0x14e   : > { %680 = vmatpush1.bf16.msra.mxu0 %v2334_v22  ;;  %1789 = vmatpush3.bf16.msra.mxu1 %v2360_v25 }
 0x14f   : > { %799 = vmatprep.subr.bf16.mxu0 %v2208_v0  ;;  %1794 = vmatprep.subr.bf16.mxu1 %v2162_v2 }
 0x204   : > { %v565_v55 = vpop.f32.mrb[4].mxu0  ;;  %v608_v56 = vpop.f32.mrb[4].mxu1 }
 0x205   : > { %v566_v57 = vadd.f32 %v565_v55, %v2412_v31  ;;  %v567_v58 = vpop.f32.mrb[5].mxu0  ;;  %v1772_v59 = vpop.f32.mrb[5].mxu1  ;;  %v609_v50 = vadd.f32 %v608_v56, %v2424_v62  ;;  %v1591_v55 = vld [vmem:[%s2410_s23 + $0x40] sm:$0xff] }
 0x206   : > { %v568_v60 = vadd.f32 %v567_v58, %v2414_v32  ;;  %v569_v63 = vpop.f32.mrb[6].mxu0  ;;  %v611_v26 = vpop.f32.mrb[6].mxu1 }
 0x207   : > { %v615_v28 = vadd.f32 %v1589_v54, %v566_v57  ;;  %v570_v33 = vadd.f32 %v569_v63, %v2412_v31  ;;  %v571_v34 = vpop.f32.mrb[7].mxu0  ;;  %v1773_v35 = vpop.f32.mrb[7].mxu1  ;;  %v612_v58 = vadd.f32 %v611_v26, %v2424_v62 }
 0x208   : > { %v572_v36 = vadd.f32 %v571_v34, %v2414_v32  ;;  %v629_v39 = vadd.f32 %v1590_v30, %v568_v60  ;;  %v1594_v60 = vld [vmem:[%s2410_s23 + $0x58] sm:$0xff] }
 0x209   : > { %v1595_v37 = vmul.f32 -1.442695, %v615_v28  ;;  %v616_v38 = vadd.f32 %v1592_v61, %v570_v33 }
 0x20a   : > { %v630_v29 = vadd.f32 %v1593_v27, %v572_v36  ;;  %v1597_v41 = vmul.f32 -1.442695, %v629_v39 }
 0x20b   : > { %1974 = vpow2.f32 %v1595_v37  ;;  %v1596_v40 = vmul.f32 -1.442695, %v616_v38 }
 0x20c   : > { %v1598_v42 = vmul.f32 -1.442695, %v630_v29 }
 0x20d   : > { %1976 = vpow2.f32 %v1596_v40 }
 0x20e   : > { %1978 = vpow2.f32 %v1597_v41 }
 0x20f   : > { %1980 = vpow2.f32 %v1598_v42 }
 0x215   : > { %v1975_v43 = vpop.eup %1974 }
 0x216   : > { %v623_v44 = vadd.f32 1.0, %v1975_v43 }
 0x217   : > { %v1977_v45 = vpop.eup %1976 }
 0x218   : > { %1982 = vrcp.f32 %v623_v44  ;;  %v624_v46 = vadd.f32 1.0, %v1977_v45  ;;  %v1979_v47 = vpop.eup %1978 }
 0x219   : > { %v1981_v48 = vpop.eup %1980  ;;  %v637_v49 = vadd.f32 1.0, %v1979_v47 }
 0x21a   : > { %1984 = vrcp.f32 %v624_v46  ;;  %v638_v53 = vadd.f32 1.0, %v1981_v48  ;;  %v1602_v46 = vld [vmem:[%s2410_s23 + $0x78] sm:$0xff] }
 0x21b   : > { %1986 = vrcp.f32 %v637_v49 }
 0x21c   : > { %1988 = vrcp.f32 %v638_v53 }
 0x222   : > { %v1983_v54 = vpop.eup %1982 }
 0x223   : > { %v643_v57 = vmul.f32 %v1983_v54, %v609_v50  ;;  %v1600_v50 = vld [vmem:[%s2410_s23 + $0x68] sm:$0xff] }
 0x224   : > { %v1985_v59 = vpop.eup %1984 }
 0x225   : > { %v645_v61 = vadd.f32 %v1591_v55, %v643_v57  ;;  %v644_v63 = vmul.f32 %v1985_v59, %v612_v58  ;;  %v1987_v30 = vpop.eup %1986 }
 0x226   : > { %v1989_v33 = vpop.eup %1988  ;;  %v649_v34 = vsub.f32 1.0, %v1987_v30  ;;  %v653_v37 = vmul.f32 %v1987_v30, %v2430_v51  ;;  %v1599_v51 = vld [vmem:[%s2410_s23 + $0x60] sm:$0xff] }
 0x227   : > { %1990 = vtanh.f32 %v645_v61  ;;  %v646_v28 = vadd.f32 %v1594_v60, %v644_v63  ;;  %v650_v56 = vsub.f32 1.0, %v1989_v33  ;;  %v654_v26 = vmul.f32 %v1989_v33, %v2432_v52  ;;  %v1603_v60 = vld [vmem:[%s2410_s23 + $0x80] sm:$0xff] }
 0x229   : > { %1992 = vtanh.f32 %v646_v28 }
 0x231   : > { %v1991_v35 = vpop.eup %1990 }
 0x232   : > { %v651_v36 = vmul.f32 %v1991_v35, %v649_v34 }
 0x233   : > { %v1993_v38 = vpop.eup %1992 }
 0x234   : > { %v652_v27 = vmul.f32 %v1993_v38, %v650_v56  ;;  %v2485_v39 = vadd.f32 %v653_v37, %v651_v36 }
 0x236   : > { %v2487_v40 = vadd.f32 %v654_v26, %v652_v27 }
 0x238   : > { %v664_v29 = vpack.c.bf16 %v2487_v40, %v2485_v39 }
 0x23a   : > { %698 = vmatmul.mubr.bf16.vlgmr.msra.gmra.mrb[8].mxu0 %v664_v29  ;;  %1791 = vmatmul.mubr.bf16.vlgmr.msra.gmra.mrb[8].mxu1 %v664_v29 }
 0x23b   : > { %800 = vmatpush1.bf16.msra.mxu0 %v2213_v1  ;;  %1795 = vmatpush3.bf16.msra.mxu1 %v2252_v9 }
 0x23c   : > { %801 = vmatprep.subr.bf16.mxu0 %v2221_v4  ;;  %1796 = vmatprep.subr.bf16.mxu1 %v2162_v2 }
 0x23d   : > { %831 = vmatprep.mubr.bf16.mxu0 %v2163_v3  ;;  %1810 = vmatprep.mubr.msk.bf16.mxu1 %vm2164_vm0, %v2162_v2 }
 0x23f   : > { %802 = vmatpush1.bf16.msra.mxu0 %v2229_v5  ;;  %1797 = vmatpush3.bf16.msra.mxu1 %v2270_v12 }
 0x240   : > { %803 = vmatprep.subr.bf16.mxu0 %v2235_v6  ;;  %1798 = vmatprep.subr.bf16.mxu1 %v2162_v2 }
 0x243   : > { %804 = vmatpush1.bf16.msra.mxu0 %v2241_v7  ;;  %1799 = vmatpush3.bf16.msra.mxu1 %v2289_v15 }
 0x244   : > { %805 = vmatprep.subr.bf16.mxu0 %v2247_v8  ;;  %1800 = vmatprep.subr.bf16.mxu1 %v2162_v2 }
 0x247   : > { %806 = vmatpush1.bf16.msra.mxu0 %v2258_v10  ;;  %1801 = vmatpush3.bf16.msra.mxu1 %v2308_v18 }
 0x248   : > { %807 = vmatprep.subr.bf16.mxu0 %v2263_v11  ;;  %1802 = vmatprep.subr.bf16.mxu1 %v2162_v2 }
 0x24b   : > { %808 = vmatpush1.bf16.msra.mxu0 %v2276_v13  ;;  %1803 = vmatpush3.bf16.msra.mxu1 %v2327_v21 }
 0x24c   : > { %809 = vmatprep.subr.bf16.mxu0 %v2282_v14  ;;  %1804 = vmatprep.subr.bf16.mxu1 %v2162_v2 }
 0x24f   : > { %810 = vmatpush1.bf16.msra.mxu0 %v2296_v16  ;;  %1805 = vmatpush3.bf16.msra.mxu1 %v2341_v23 }
 0x250   : > { %811 = vmatprep.subr.bf16.mxu0 %v2302_v17  ;;  %1806 = vmatprep.subr.bf16.mxu1 %v2162_v2 }
 0x253   : > { %812 = vmatpush1.bf16.msra.mxu0 %v2315_v19  ;;  %1807 = vmatpush3.bf16.msra.mxu1 %v2349_v24 }
 0x254   : > { %813 = vmatprep.subr.bf16.mxu0 %v2321_v20  ;;  %1808 = vmatprep.subr.bf16.mxu1 %v2162_v2 }
 0x257   : > { %814 = vmatpush1.bf16.msra.mxu0 %v2334_v22  ;;  %1809 = vmatpush3.bf16.msra.mxu1 %v2360_v25 }
 0x258   : > { %933 = vmatprep.subr.bf16.mxu0 %v2208_v0  ;;  %1814 = vmatprep.subr.bf16.mxu1 %v2162_v2 }
 0x30d   : > { %v699_v52 = vpop.f32.mrb[8].mxu0  ;;  %v742_v41 = vpop.f32.mrb[8].mxu1 }
 0x30e   : > { %v700_v42 = vadd.f32 %v699_v52, %v2412_v31  ;;  %v701_v43 = vpop.f32.mrb[9].mxu0  ;;  %v1792_v44 = vpop.f32.mrb[9].mxu1  ;;  %v743_v26 = vadd.f32 %v742_v41, %v2424_v62  ;;  %v1601_v52 = vld [vmem:[%s2410_s23 + $0x70] sm:$0xff] }
 0x30f   : > { %v702_v45 = vadd.f32 %v701_v43, %v2414_v32  ;;  %v703_v47 = vpop.f32.mrb[10].mxu0  ;;  %v745_v48 = vpop.f32.mrb[10].mxu1 }
 0x310   : > { %v749_v49 = vadd.f32 %v1599_v51, %v700_v42  ;;  %v704_v53 = vadd.f32 %v703_v47, %v2412_v31  ;;  %v705_v54 = vpop.f32.mrb[11].mxu0  ;;  %v1793_v55 = vpop.f32.mrb[11].mxu1  ;;  %v746_v43 = vadd.f32 %v745_v48, %v2424_v62 }
 0x311   : > { %v706_v57 = vadd.f32 %v705_v54, %v2414_v32  ;;  %v763_v61 = vadd.f32 %v1600_v50, %v702_v45  ;;  %v1604_v45 = vld [vmem:[%s2410_s23 + $0x88] sm:$0xff] }
 0x312   : > { %v1605_v58 = vmul.f32 -1.442695, %v749_v49  ;;  %v750_v59 = vadd.f32 %v1602_v46, %v704_v53 }
 0x313   : > { %v764_v28 = vadd.f32 %v1603_v60, %v706_v57  ;;  %v1607_v30 = vmul.f32 -1.442695, %v763_v61 }
 0x314   : > { %1994 = vpow2.f32 %v1605_v58  ;;  %v1606_v63 = vmul.f32 -1.442695, %v750_v59 }
 0x315   : > { %v1608_v33 = vmul.f32 -1.442695, %v764_v28 }
 0x316   : > { %1996 = vpow2.f32 %v1606_v63 }
 0x317   : > { %1998 = vpow2.f32 %v1607_v30 }
 0x318   : > { %2000 = vpow2.f32 %v1608_v33 }
 0x31e   : > { %v1995_v34 = vpop.eup %1994 }
 0x31f   : > { %v757_v35 = vadd.f32 1.0, %v1995_v34 }
 0x320   : > { %v1997_v56 = vpop.eup %1996 }
 0x321   : > { %2002 = vrcp.f32 %v757_v35  ;;  %v758_v36 = vadd.f32 1.0, %v1997_v56  ;;  %v1999_v37 = vpop.eup %1998 }
 0x322   : > { %v2001_v38 = vpop.eup %2000  ;;  %v771_v27 = vadd.f32 1.0, %v1999_v37 }
 0x323   : > { %2004 = vrcp.f32 %v758_v36  ;;  %v772_v29 = vadd.f32 1.0, %v2001_v38  ;;  %v1612_v36 = vld [vmem:[%s2410_s23 + $0xa8] sm:$0xff] }
 0x324   : > { %2006 = vrcp.f32 %v771_v27 }
 0x325   : > { %2008 = vrcp.f32 %v772_v29 }
 0x32b   : > { %v2003_v51 = vpop.eup %2002 }
 0x32c   : > { %v777_v42 = vmul.f32 %v2003_v51, %v743_v26  ;;  %v1610_v26 = vld [vmem:[%s2410_s23 + $0x98] sm:$0xff] }
 0x32d   : > { %v2005_v44 = vpop.eup %2004 }
 0x32e   : > { %v779_v46 = vadd.f32 %v1601_v52, %v777_v42  ;;  %v778_v47 = vmul.f32 %v2005_v44, %v746_v43  ;;  %v2007_v50 = vpop.eup %2006  ;;  %v1613_v44 = vld [vmem:[%s2410_s23 + $0xb0] sm:$0xff] }
 0x32f   : > { %v2009_v53 = vpop.eup %2008  ;;  %v783_v54 = vsub.f32 1.0, %v2007_v50  ;;  %v787_v58 = vmul.f32 %v2007_v50, %v2485_v39  ;;  %v1609_v39 = vld [vmem:[%s2410_s23 + $0x90] sm:$0xff] }
 0x330   : > { %2010 = vtanh.f32 %v779_v46  ;;  %v780_v49 = vadd.f32 %v1604_v45, %v778_v47  ;;  %v784_v41 = vsub.f32 1.0, %v2009_v53  ;;  %v788_v48 = vmul.f32 %v2009_v53, %v2487_v40 }
 0x332   : > { %2012 = vtanh.f32 %v780_v49 }
 0x33a   : > { %v2011_v55 = vpop.eup %2010 }
 0x33b   : > { %v785_v57 = vmul.f32 %v2011_v55, %v783_v54 }
 0x33c   : > { %v2013_v59 = vpop.eup %2012 }
 0x33d   : > { %v786_v60 = vmul.f32 %v2013_v59, %v784_v41  ;;  %v2540_v61 = vadd.f32 %v787_v58, %v785_v57 }
 0x33f   : > { %v2542_v63 = vadd.f32 %v788_v48, %v786_v60 }
 0x341   : > { %v798_v28 = vpack.c.bf16 %v2542_v63, %v2540_v61 }
 0x343   : > { %832 = vmatmul.mubr.bf16.vlgmr.msra.gmra.mrb[12].mxu0 %v798_v28  ;;  %1811 = vmatmul.mubr.bf16.vlgmr.msra.gmra.mrb[12].mxu1 %v798_v28 }
 0x344   : > { %934 = vmatpush1.bf16.msra.mxu0 %v2213_v1  ;;  %1815 = vmatpush3.bf16.msra.mxu1 %v2252_v9 }
 0x345   : > { %935 = vmatprep.subr.bf16.mxu0 %v2221_v4  ;;  %1816 = vmatprep.subr.bf16.mxu1 %v2162_v2 }
 0x346   : > { %965 = vmatprep.mubr.bf16.mxu0 %v2163_v3  ;;  %1830 = vmatprep.mubr.msk.bf16.mxu1 %vm2164_vm0, %v2162_v2 }
 0x348   : > { %936 = vmatpush1.bf16.msra.mxu0 %v2229_v5  ;;  %1817 = vmatpush3.bf16.msra.mxu1 %v2270_v12 }
 0x349   : > { %937 = vmatprep.subr.bf16.mxu0 %v2235_v6  ;;  %1818 = vmatprep.subr.bf16.mxu1 %v2162_v2 }
 0x34c   : > { %938 = vmatpush1.bf16.msra.mxu0 %v2241_v7  ;;  %1819 = vmatpush3.bf16.msra.mxu1 %v2289_v15 }
 0x34d   : > { %939 = vmatprep.subr.bf16.mxu0 %v2247_v8  ;;  %1820 = vmatprep.subr.bf16.mxu1 %v2162_v2 }
 0x350   : > { %940 = vmatpush1.bf16.msra.mxu0 %v2258_v10  ;;  %1821 = vmatpush3.bf16.msra.mxu1 %v2308_v18 }
 0x351   : > { %941 = vmatprep.subr.bf16.mxu0 %v2263_v11  ;;  %1822 = vmatprep.subr.bf16.mxu1 %v2162_v2 }
 0x354   : > { %942 = vmatpush1.bf16.msra.mxu0 %v2276_v13  ;;  %1823 = vmatpush3.bf16.msra.mxu1 %v2327_v21 }
 0x355   : > { %943 = vmatprep.subr.bf16.mxu0 %v2282_v14  ;;  %1824 = vmatprep.subr.bf16.mxu1 %v2162_v2 }
 0x358   : > { %944 = vmatpush1.bf16.msra.mxu0 %v2296_v16  ;;  %1825 = vmatpush3.bf16.msra.mxu1 %v2341_v23 }
 0x359   : > { %945 = vmatprep.subr.bf16.mxu0 %v2302_v17  ;;  %1826 = vmatprep.subr.bf16.mxu1 %v2162_v2 }
 0x35c   : > { %946 = vmatpush1.bf16.msra.mxu0 %v2315_v19  ;;  %1827 = vmatpush3.bf16.msra.mxu1 %v2349_v24 }
 0x35d   : > { %947 = vmatprep.subr.bf16.mxu0 %v2321_v20  ;;  %1828 = vmatprep.subr.bf16.mxu1 %v2162_v2 }
 0x360   : > { %948 = vmatpush1.bf16.msra.mxu0 %v2334_v22  ;;  %1829 = vmatpush3.bf16.msra.mxu1 %v2360_v25 }
 0x361   : > { %1067 = vmatprep.subr.bf16.mxu0 %v2208_v0  ;;  %1834 = vmatprep.subr.bf16.mxu1 %v2162_v2 }
 0x416   : > { %v833_v40 = vpop.f32.mrb[12].mxu0  ;;  %v876_v30 = vpop.f32.mrb[12].mxu1 }
 0x417   : > { %v834_v33 = vadd.f32 %v833_v40, %v2412_v31  ;;  %v835_v34 = vpop.f32.mrb[13].mxu0  ;;  %v1812_v35 = vpop.f32.mrb[13].mxu1  ;;  %v877_v60 = vadd.f32 %v876_v30, %v2424_v62 }
 0x418   : > { %v836_v56 = vadd.f32 %v835_v34, %v2414_v32  ;;  %v837_v37 = vpop.f32.mrb[14].mxu0  ;;  %v879_v38 = vpop.f32.mrb[14].mxu1  ;;  %v1614_v35 = vld [vmem:[%s2410_s23 + $0xb8] sm:$0xff] }
 0x419   : > { %v883_v27 = vadd.f32 %v1609_v39, %v834_v33  ;;  %v838_v29 = vadd.f32 %v837_v37, %v2412_v31  ;;  %v839_v0 = vpop.f32.mrb[15].mxu0  ;;  %v1813_v51 = vpop.f32.mrb[15].mxu1  ;;  %v1611_v39 = vld [vmem:[%s2410_s23 + $0xa0] sm:$0xff]  ;;  %v880_v33 = vadd.f32 %v879_v38, %v2424_v62 }
 0x41a   : > { %v840_v52 = vadd.f32 %v839_v0, %v2414_v32  ;;  %v897_v45 = vadd.f32 %v1610_v26, %v836_v56 }
 0x41b   : > { %v1615_v42 = vmul.f32 -1.442695, %v883_v27  ;;  %v884_v43 = vadd.f32 %v1612_v36, %v838_v29 }
 0x41c   : > { %v898_v47 = vadd.f32 %v1613_v44, %v840_v52  ;;  %v1617_v49 = vmul.f32 -1.442695, %v897_v45 }
 0x41d   : > { %2014 = vpow2.f32 %v1615_v42  ;;  %v1616_v46 = vmul.f32 -1.442695, %v884_v43 }
 0x41e   : > { %v1618_v50 = vmul.f32 -1.442695, %v898_v47 }
 0x41f   : > { %2016 = vpow2.f32 %v1616_v46 }
 0x420   : > { %2018 = vpow2.f32 %v1617_v49 }
 0x421   : > { %2020 = vpow2.f32 %v1618_v50 }
 0x427   : > { %v2015_v53 = vpop.eup %2014 }
 0x428   : > { %v891_v54 = vadd.f32 1.0, %v2015_v53 }
 0x429   : > { %v2017_v55 = vpop.eup %2016 }
 0x42a   : > { %2022 = vrcp.f32 %v891_v54  ;;  %v892_v41 = vadd.f32 1.0, %v2017_v55  ;;  %v2019_v57 = vpop.eup %2018 }
 0x42b   : > { %v2021_v58 = vpop.eup %2020  ;;  %v905_v59 = vadd.f32 1.0, %v2019_v57 }
 0x42c   : > { %2024 = vrcp.f32 %v892_v41  ;;  %v906_v48 = vadd.f32 1.0, %v2021_v58 }
 0x42d   : > { %2026 = vrcp.f32 %v905_v59 }
 0x42e   : > { %2028 = vrcp.f32 %v906_v48 }
 0x434   : > { %v2023_v28 = vpop.eup %2022 }
 0x435   : > { %v911_v40 = vmul.f32 %v2023_v28, %v877_v60  ;;  %v1621_v60 = vld [vmem:[%s2410_s23 + $0xd0] sm:$0xff] }
 0x436   : > { %v2025_v34 = vpop.eup %2024 }
 0x437   : > { %v913_v56 = vadd.f32 %v1611_v39, %v911_v40  ;;  %v912_v36 = vmul.f32 %v2025_v34, %v880_v33  ;;  %v2027_v27 = vpop.eup %2026  ;;  %v1624_v40 = vld [vmem:[%s2410_s23 + $0xe8] sm:$0xff] }
 0x438   : > { %v2029_v26 = vpop.eup %2028  ;;  %v917_v29 = vsub.f32 1.0, %v2027_v27  ;;  %v921_v52 = vmul.f32 %v2027_v27, %v2540_v61 }
 0x439   : > { %2030 = vtanh.f32 %v913_v56  ;;  %v914_v37 = vadd.f32 %v1614_v35, %v912_v36  ;;  %v918_v30 = vsub.f32 1.0, %v2029_v26  ;;  %v922_v38 = vmul.f32 %v2029_v26, %v2542_v63 }
 0x43b   : > { %2032 = vtanh.f32 %v914_v37 }
 0x443   : > { %v2031_v0 = vpop.eup %2030 }
 0x444   : > { %v919_v51 = vmul.f32 %v2031_v0, %v917_v29 }
 0x445   : > { %v2033_v42 = vpop.eup %2032 }
 0x446   : > { %v920_v43 = vmul.f32 %v2033_v42, %v918_v30  ;;  %v2595_v44 = vadd.f32 %v921_v52, %v919_v51 }
 0x448   : > { %v2597_v45 = vadd.f32 %v922_v38, %v920_v43 }
 0x44a   : > { %v932_v46 = vpack.c.bf16 %v2597_v45, %v2595_v44 }
 0x44c   : > { %966 = vmatmul.mubr.bf16.vlgmr.msra.gmra.mrb[16].mxu0 %v932_v46  ;;  %1831 = vmatmul.mubr.bf16.vlgmr.msra.gmra.mrb[16].mxu1 %v932_v46  ;;  %v2664_v46 = vld [vmem:[%s2912_s1] ss:$12 sps:$4 sm:$0xff]  }
 0x44d   : > { %1068 = vmatpush1.bf16.msra.mxu0 %v2213_v1  ;;  %1835 = vmatpush3.bf16.msra.mxu1 %v2252_v9  ;;  %v2637_v1 = vld [vmem:[%s2912_s1 + $0x4] ss:$12 sps:$4 sm:$0xff]  }
 0x44e   : > { %1069 = vmatprep.subr.bf16.mxu0 %v2221_v4  ;;  %1836 = vmatprep.subr.bf16.mxu1 %v2162_v2  ;;  %v1619_v4 = vld [vmem:[%s2410_s23 + $0xc0] sm:$0xff] }
 0x44f   : > { %1099 = vmatprep.mubr.bf16.mxu0 %v2163_v3  ;;  %1850 = vmatprep.mubr.msk.bf16.mxu1 %vm2164_vm0, %v2162_v2 }
 0x451   : > { %1070 = vmatpush1.bf16.msra.mxu0 %v2229_v5  ;;  %1837 = vmatpush3.bf16.msra.mxu1 %v2270_v12 }
 0x452   : > { %1071 = vmatprep.subr.bf16.mxu0 %v2235_v6  ;;  %1838 = vmatprep.subr.bf16.mxu1 %v2162_v2 }
 0x455   : > { %1072 = vmatpush1.bf16.msra.mxu0 %v2241_v7  ;;  %1839 = vmatpush3.bf16.msra.mxu1 %v2289_v15  ;;  %v1620_v15 = vld [vmem:[%s2410_s23 + $0xc8] sm:$0xff] }
 0x456   : > { %1073 = vmatprep.subr.bf16.mxu0 %v2247_v8  ;;  %1840 = vmatprep.subr.bf16.mxu1 %v2162_v2 }
 0x459   : > { %1074 = vmatpush1.bf16.msra.mxu0 %v2258_v10  ;;  %1841 = vmatpush3.bf16.msra.mxu1 %v2308_v18 }
 0x45a   : > { %1075 = vmatprep.subr.bf16.mxu0 %v2263_v11  ;;  %1842 = vmatprep.subr.bf16.mxu1 %v2162_v2  ;;  %v1622_v11 = vld [vmem:[%s2410_s23 + $0xd8] sm:$0xff] }
 0x45d   : > { %1076 = vmatpush1.bf16.msra.mxu0 %v2276_v13  ;;  %1843 = vmatpush3.bf16.msra.mxu1 %v2327_v21 }
 0x45e   : > { %1077 = vmatprep.subr.bf16.mxu0 %v2282_v14  ;;  %1844 = vmatprep.subr.bf16.mxu1 %v2162_v2 }
 0x461   : > { %1078 = vmatpush1.bf16.msra.mxu0 %v2296_v16  ;;  %1845 = vmatpush3.bf16.msra.mxu1 %v2341_v23 }
 0x462   : > { %1079 = vmatprep.subr.bf16.mxu0 %v2302_v17  ;;  %1846 = vmatprep.subr.bf16.mxu1 %v2162_v2 }
 0x465   : > { %1080 = vmatpush1.bf16.msra.mxu0 %v2315_v19  ;;  %1847 = vmatpush3.bf16.msra.mxu1 %v2349_v24 }
 0x466   : > { %1081 = vmatprep.subr.bf16.mxu0 %v2321_v20  ;;  %1848 = vmatprep.subr.bf16.mxu1 %v2162_v2 }
 0x469   : > { %1082 = vmatpush1.bf16.msra.mxu0 %v2334_v22  ;;  %1849 = vmatpush3.bf16.msra.mxu1 %v2360_v25  ;;  %v1623_v22 = vld [vmem:[%s2410_s23 + $0xe0] sm:$0xff] }
 0x46a   : > { %1201 = vmatprep.subr.bf16.mxu0 %v2637_v1  ;;  %1854 = vmatprep.subr.bf16.mxu1 %v2162_v2 }
 0x51f   : > { %v967_v5 = vpop.f32.mrb[16].mxu0  ;;  %v1010_v6 = vpop.f32.mrb[16].mxu1 }
 0x520   : > { %v968_v7 = vadd.f32 %v967_v5, %v2412_v31  ;;  %v969_v8 = vpop.f32.mrb[17].mxu0  ;;  %v1832_v9 = vpop.f32.mrb[17].mxu1  ;;  %v1011_v57 = vadd.f32 %v1010_v6, %v2424_v62  ;;  %v2692_v5 = vld [vmem:[%s2912_s1 + $0x20] ss:$12 sps:$4 sm:$0xff]  }
 0x521   : > { %v970_v10 = vadd.f32 %v969_v8, %v2414_v32  ;;  %v971_v12 = vpop.f32.mrb[18].mxu0  ;;  %v1013_v13 = vpop.f32.mrb[18].mxu1  ;;  %v2698_v6 = vld [vmem:[%s2912_s1 + $0x34] ss:$12 sps:$4 sm:$0xff]   ;;  %v2711_v8 = vld [vmem:[%s2912_s1 + $0x38] ss:$12 sps:$4 sm:$0xff]  }
 0x522   : > { %v1017_v14 = vadd.f32 %v1619_v4, %v968_v7  ;;  %v972_v16 = vadd.f32 %v971_v12, %v2412_v31  ;;  %v973_v17 = vpop.f32.mrb[19].mxu0  ;;  %v1833_v18 = vpop.f32.mrb[19].mxu1  ;;  %v1014_v28 = vadd.f32 %v1013_v13, %v2424_v62  ;;  %v2686_v4 = vld [vmem:[%s2912_s1 + $0x18] ss:$12 sps:$4 sm:$0xff]   ;;  %v2705_v7 = vld [vmem:[%s2912_s1 + $0x30] ss:$12 sps:$4 sm:$0xff]  }
 0x523   : > { %v974_v19 = vadd.f32 %v973_v17, %v2414_v32  ;;  %v1031_v23 = vadd.f32 %v1620_v15, %v970_v10  ;;  %v2717_v9 = vld [vmem:[%s2912_s1 + $0x4c] ss:$12 sps:$4 sm:$0xff]   ;;  %v2724_v10 = vld [vmem:[%s2912_s1 + $0x48] ss:$12 sps:$4 sm:$0xff]   ;;  %v2736_v12 = vld [vmem:[%s2912_s1 + $0x64] ss:$12 sps:$4 sm:$0xff]  }
 0x524   : > { %v1625_v20 = vmul.f32 -1.442695, %v1017_v14  ;;  %v1018_v21 = vadd.f32 %v1622_v11, %v972_v16  ;;  %v2730_v11 = vld [vmem:[%s2912_s1 + $0x50] ss:$12 sps:$4 sm:$0xff]   ;;  %v2743_v13 = vld [vmem:[%s2912_s1 + $0x60] ss:$12 sps:$4 sm:$0xff]  }
 0x525   : > { %v1032_v25 = vadd.f32 %v1623_v22, %v974_v19  ;;  %v1627_v61 = vmul.f32 -1.442695, %v1031_v23  ;;  %v2749_v14 = vld [vmem:[%s2912_s1 + $0x68] ss:$12 sps:$4 sm:$0xff]   ;;  %v2762_v16 = vld [vmem:[%s2912_s1 + $0x78] ss:$12 sps:$4 sm:$0xff]  }
 0x526   : > { %2034 = vpow2.f32 %v1625_v20  ;;  %v1626_v24 = vmul.f32 -1.442695, %v1018_v21  ;;  %v2755_v15 = vld [vmem:[%s2912_s1 + $0x7c] ss:$12 sps:$4 sm:$0xff]   ;;  %v2768_v17 = vld [vmem:[%s2912_s1 + $0x80] ss:$12 sps:$4 sm:$0xff]  }
 0x527   : > { %v1628_v63 = vmul.f32 -1.442695, %v1032_v25  ;;  %v2774_v18 = vld [vmem:[%s2912_s1 + $0x94] ss:$12 sps:$4 sm:$0xff]   ;;  %v2781_v19 = vld [vmem:[%s2912_s1 + $0x90] ss:$12 sps:$4 sm:$0xff]  }
 0x528   : > { %2036 = vpow2.f32 %v1626_v24  ;;  %v2787_v20 = vld [vmem:[%s2912_s1 + $0x98] ss:$12 sps:$4 sm:$0xff]   ;;  %v2800_v22 = vld [vmem:[%s2912_s1 + $0xa8] ss:$12 sps:$4 sm:$0xff]   ;;  %v2806_v23 = vld [vmem:[%s2912_s1 + $0xb0] ss:$12 sps:$4 sm:$0xff]  }
 0x529   : > { %2038 = vpow2.f32 %v1627_v61  ;;  %v2793_v21 = vld [vmem:[%s2912_s1 + $0xac] ss:$12 sps:$4 sm:$0xff]   ;;  %v1629_v24 = vld [vmem:[%s2410_s23 + $0xf0] sm:$0xff] }
 0x52a   : > { %2040 = vpow2.f32 %v1628_v63 }
 0x530   : > { %v2035_v47 = vpop.eup %2034 }
 0x531   : > { %v1025_v49 = vadd.f32 1.0, %v2035_v47 }
 0x532   : > { %v2037_v50 = vpop.eup %2036 }
 0x533   : > { %2042 = vrcp.f32 %v1025_v49  ;;  %v1026_v53 = vadd.f32 1.0, %v2037_v50  ;;  %v2039_v54 = vpop.eup %2038 }
 0x534   : > { %v2041_v55 = vpop.eup %2040  ;;  %v1039_v41 = vadd.f32 1.0, %v2039_v54 }
 0x535   : > { %2044 = vrcp.f32 %v1026_v53  ;;  %v1040_v58 = vadd.f32 1.0, %v2041_v55  ;;  %v1632_v53 = vld [vmem:[%s2410_s23 + $0x108] sm:$0xff] }
 0x536   : > { %2046 = vrcp.f32 %v1039_v41 }
 0x537   : > { %2048 = vrcp.f32 %v1040_v58 }
 0x53d   : > { %v2043_v59 = vpop.eup %2042 }
 0x53e   : > { %v1045_v48 = vmul.f32 %v2043_v59, %v1011_v57  ;;  %v1630_v57 = vld [vmem:[%s2410_s23 + $0xf8] sm:$0xff] }
 0x53f   : > { %v2045_v39 = vpop.eup %2044 }
 0x540   : > { %v1047_v33 = vadd.f32 %v1621_v60, %v1045_v48  ;;  %v1046_v34 = vmul.f32 %v2045_v39, %v1014_v28  ;;  %v2047_v56 = vpop.eup %2046  ;;  %v1633_v39 = vld [vmem:[%s2410_s23 + $0x110] sm:$0xff] }
 0x541   : > { %v2049_v36 = vpop.eup %2048  ;;  %v1051_v37 = vsub.f32 1.0, %v2047_v56  ;;  %v1055_v0 = vmul.f32 %v2047_v56, %v2595_v44  ;;  %v2670_v44 = vld [vmem:[%s2912_s1 + $0x8] ss:$12 sps:$4 sm:$0xff]  }
 0x542   : > { %2050 = vtanh.f32 %v1047_v33  ;;  %v1048_v35 = vadd.f32 %v1624_v40, %v1046_v34  ;;  %v1052_v26 = vsub.f32 1.0, %v2049_v36  ;;  %v1056_v52 = vmul.f32 %v2049_v36, %v2597_v45  ;;  %v2676_v45 = vld [vmem:[%s2912_s1 + $0x1c] ss:$12 sps:$4 sm:$0xff]  }
 0x544   : > { %2052 = vtanh.f32 %v1048_v35 }
 0x54c   : > { %v2051_v27 = vpop.eup %2050 }
 0x54d   : > { %v1053_v29 = vmul.f32 %v2051_v27, %v1051_v37 }
 0x54e   : > { %v2053_v30 = vpop.eup %2052 }
 0x54f   : > { %v1054_v51 = vmul.f32 %v2053_v30, %v1052_v26  ;;  %v2655_v42 = vadd.f32 %v1055_v0, %v1053_v29 }
 0x551   : > { %v2657_v43 = vadd.f32 %v1056_v52, %v1054_v51 }
 0x553   : > { %v1066_v38 = vpack.c.bf16 %v2657_v43, %v2655_v42 }
 0x555   : > { %1100 = vmatmul.mubr.bf16.vlgmr.msra.gmra.mrb[20].mxu0 %v1066_v38  ;;  %1851 = vmatmul.mubr.bf16.vlgmr.msra.gmra.mrb[20].mxu1 %v1066_v38 }
 0x556   : > { %1202 = vmatpush1.bf16.msra.mxu0 %v2664_v46  ;;  %1855 = vmatpush3.bf16.msra.mxu1 %v2670_v44 }
 0x557   : > { %1203 = vmatprep.subr.bf16.mxu0 %v2676_v45  ;;  %1856 = vmatprep.subr.bf16.mxu1 %v2162_v2 }
 0x558   : > { %1233 = vmatprep.mubr.bf16.mxu0 %v2163_v3  ;;  %1870 = vmatprep.mubr.msk.bf16.mxu1 %vm2164_vm0, %v2162_v2 }
 0x55a   : > { %1204 = vmatpush1.bf16.msra.mxu0 %v2686_v4  ;;  %1857 = vmatpush3.bf16.msra.mxu1 %v2692_v5 }
 0x55b   : > { %1205 = vmatprep.subr.bf16.mxu0 %v2698_v6  ;;  %1858 = vmatprep.subr.bf16.mxu1 %v2162_v2 }
 0x55e   : > { %1206 = vmatpush1.bf16.msra.mxu0 %v2705_v7  ;;  %1859 = vmatpush3.bf16.msra.mxu1 %v2711_v8 }
 0x55f   : > { %1207 = vmatprep.subr.bf16.mxu0 %v2717_v9  ;;  %1860 = vmatprep.subr.bf16.mxu1 %v2162_v2 }
 0x562   : > { %1208 = vmatpush1.bf16.msra.mxu0 %v2724_v10  ;;  %1861 = vmatpush3.bf16.msra.mxu1 %v2730_v11 }
 0x563   : > { %1209 = vmatprep.subr.bf16.mxu0 %v2736_v12  ;;  %1862 = vmatprep.subr.bf16.mxu1 %v2162_v2 }
 0x566   : > { %1210 = vmatpush1.bf16.msra.mxu0 %v2743_v13  ;;  %1863 = vmatpush3.bf16.msra.mxu1 %v2749_v14 }
 0x567   : > { %1211 = vmatprep.subr.bf16.mxu0 %v2755_v15  ;;  %1864 = vmatprep.subr.bf16.mxu1 %v2162_v2 }
 0x56a   : > { %1212 = vmatpush1.bf16.msra.mxu0 %v2762_v16  ;;  %1865 = vmatpush3.bf16.msra.mxu1 %v2768_v17 }
 0x56b   : > { %1213 = vmatprep.subr.bf16.mxu0 %v2774_v18  ;;  %1866 = vmatprep.subr.bf16.mxu1 %v2162_v2 }
 0x56e   : > { %1214 = vmatpush1.bf16.msra.mxu0 %v2781_v19  ;;  %1867 = vmatpush3.bf16.msra.mxu1 %v2787_v20 }
 0x56f   : > { %1215 = vmatprep.subr.bf16.mxu0 %v2793_v21  ;;  %1868 = vmatprep.subr.bf16.mxu1 %v2162_v2 }
 0x572   : > { %1216 = vmatpush1.bf16.msra.mxu0 %v2800_v22  ;;  %1869 = vmatpush3.bf16.msra.mxu1 %v2806_v23 }
 0x573   : > { %1335 = vmatprep.subr.bf16.mxu0 %v2637_v1  ;;  %1874 = vmatprep.subr.bf16.mxu1 %v2162_v2 }
 0x628   : > { %v1101_v25 = vpop.f32.mrb[20].mxu0  ;;  %v1144_v61 = vpop.f32.mrb[20].mxu1 }
 0x629   : > { %v1102_v63 = vadd.f32 %v1101_v25, %v2412_v31  ;;  %v1103_v47 = vpop.f32.mrb[21].mxu0  ;;  %v1852_v49 = vpop.f32.mrb[21].mxu1  ;;  %v1145_v51 = vadd.f32 %v1144_v61, %v2424_v62 }
 0x62a   : > { %v1104_v50 = vadd.f32 %v1103_v47, %v2414_v32  ;;  %v1105_v54 = vpop.f32.mrb[22].mxu0  ;;  %v1147_v55 = vpop.f32.mrb[22].mxu1  ;;  %v1634_v49 = vld [vmem:[%s2410_s23 + $0x118] sm:$0xff] }
 0x62b   : > { %v1151_v41 = vadd.f32 %v1629_v24, %v1102_v63  ;;  %v1106_v58 = vadd.f32 %v1105_v54, %v2412_v31  ;;  %v1107_v1 = vpop.f32.mrb[23].mxu0  ;;  %v1853_v59 = vpop.f32.mrb[23].mxu1  ;;  %v1631_v24 = vld [vmem:[%s2410_s23 + $0x100] sm:$0xff]  ;;  %v1148_v63 = vadd.f32 %v1147_v55, %v2424_v62 }
 0x62c   : > { %v1108_v60 = vadd.f32 %v1107_v1, %v2414_v32  ;;  %v1165_v40 = vadd.f32 %v1630_v57, %v1104_v50 }
 0x62d   : > { %v1635_v48 = vmul.f32 -1.442695, %v1151_v41  ;;  %v1152_v28 = vadd.f32 %v1632_v53, %v1106_v58 }
 0x62e   : > { %v1166_v34 = vadd.f32 %v1633_v39, %v1108_v60  ;;  %v1637_v35 = vmul.f32 -1.442695, %v1165_v40 }
 0x62f   : > { %2054 = vpow2.f32 %v1635_v48  ;;  %v1636_v33 = vmul.f32 -1.442695, %v1152_v28 }
 0x630   : > { %v1638_v56 = vmul.f32 -1.442695, %v1166_v34 }
 0x631   : > { %2056 = vpow2.f32 %v1636_v33 }
 0x632   : > { %2058 = vpow2.f32 %v1637_v35 }
 0x633   : > { %2060 = vpow2.f32 %v1638_v56 }
 0x639   : > { %v2055_v36 = vpop.eup %2054 }
 0x63a   : > { %v1159_v37 = vadd.f32 1.0, %v2055_v36 }
 0x63b   : > { %v2057_v27 = vpop.eup %2056 }
 0x63c   : > { %2062 = vrcp.f32 %v1159_v37  ;;  %v1160_v26 = vadd.f32 1.0, %v2057_v27  ;;  %v2059_v29 = vpop.eup %2058 }
 0x63d   : > { %v2061_v0 = vpop.eup %2060  ;;  %v1173_v30 = vadd.f32 1.0, %v2059_v29  ;;  %v1641_v29 = vld [vmem:[%s2410_s23 + $0x130] sm:$0xff] }
 0x63e   : > { %2064 = vrcp.f32 %v1160_v26  ;;  %v1174_v52 = vadd.f32 1.0, %v2061_v0 }
 0x63f   : > { %2066 = vrcp.f32 %v1173_v30 }
 0x640   : > { %2068 = vrcp.f32 %v1174_v52  ;;  %v1644_v52 = vld [vmem:[%s2410_s23 + $0x148] sm:$0xff] }
 0x646   : > { %v2063_v38 = vpop.eup %2062 }
 0x647   : > { %v1179_v25 = vmul.f32 %v2063_v38, %v1145_v51 }
 0x648   : > { %v2065_v47 = vpop.eup %2064 }
 0x649   : > { %v1181_v50 = vadd.f32 %v1631_v24, %v1179_v25  ;;  %v1180_v53 = vmul.f32 %v2065_v47, %v1148_v63  ;;  %v2067_v41 = vpop.eup %2066 }
 0x64a   : > { %v2069_v57 = vpop.eup %2068  ;;  %v1185_v58 = vsub.f32 1.0, %v2067_v41  ;;  %v1189_v60 = vmul.f32 %v2067_v41, %v2655_v42 }
 0x64b   : > { %2070 = vtanh.f32 %v1181_v50  ;;  %v1182_v54 = vadd.f32 %v1634_v49, %v1180_v53  ;;  %v1186_v61 = vsub.f32 1.0, %v2069_v57  ;;  %v1190_v55 = vmul.f32 %v2069_v57, %v2657_v43 }
 0x64d   : > { %2072 = vtanh.f32 %v1182_v54 }
 0x655   : > { %v2071_v1 = vpop.eup %2070 }
 0x656   : > { %v1187_v59 = vmul.f32 %v2071_v1, %v1185_v58 }
 0x657   : > { %v2073_v48 = vpop.eup %2072 }
 0x658   : > { %v1188_v28 = vmul.f32 %v2073_v48, %v1186_v61  ;;  %v2825_v39 = vadd.f32 %v1189_v60, %v1187_v59  ;;  %v1649_v48 = vld [vmem:[%s2410_s23 + $0x150] sm:$0xff] }
 0x65a   : > { %v2827_v40 = vadd.f32 %v1190_v55, %v1188_v28 }
 0x65c   : > { %v1200_v33 = vpack.c.bf16 %v2827_v40, %v2825_v39 }
 0x65e   : > { %1234 = vmatmul.mubr.bf16.vlgmr.msra.gmra.mrb[24].mxu0 %v1200_v33  ;;  %1871 = vmatmul.mubr.bf16.vlgmr.msra.gmra.mrb[24].mxu1 %v1200_v33 }
 0x65f   : > { %1336 = vmatpush1.bf16.msra.mxu0 %v2664_v46  ;;  %1875 = vmatpush3.bf16.msra.mxu1 %v2670_v44 }
 0x660   : > { %1337 = vmatprep.subr.bf16.mxu0 %v2676_v45  ;;  %1876 = vmatprep.subr.bf16.mxu1 %v2162_v2 }
 0x661   : > { %1367 = vmatprep.mubr.bf16.mxu0 %v2163_v3  ;;  %1890 = vmatprep.mubr.msk.bf16.mxu1 %vm2164_vm0, %v2162_v2  ;;  %v1639_v3 = vld [vmem:[%s2410_s23 + $0x120] sm:$0xff] }
 0x663   : > { %1338 = vmatpush1.bf16.msra.mxu0 %v2686_v4  ;;  %1877 = vmatpush3.bf16.msra.mxu1 %v2692_v5  ;;  %v1642_v5 = vld [vmem:[%s2410_s23 + $0x138] sm:$0xff] }
 0x664   : > { %1339 = vmatprep.subr.bf16.mxu0 %v2698_v6  ;;  %1878 = vmatprep.subr.bf16.mxu1 %v2162_v2 }
 0x667   : > { %1340 = vmatpush1.bf16.msra.mxu0 %v2705_v7  ;;  %1879 = vmatpush3.bf16.msra.mxu1 %v2711_v8 }
 0x668   : > { %1341 = vmatprep.subr.bf16.mxu0 %v2717_v9  ;;  %1880 = vmatprep.subr.bf16.mxu1 %v2162_v2  ;;  %v1640_v9 = vld [vmem:[%s2410_s23 + $0x128] sm:$0xff] }
 0x66b   : > { %1342 = vmatpush1.bf16.msra.mxu0 %v2724_v10  ;;  %1881 = vmatpush3.bf16.msra.mxu1 %v2730_v11 }
 0x66c   : > { %1343 = vmatprep.subr.bf16.mxu0 %v2736_v12  ;;  %1882 = vmatprep.subr.bf16.mxu1 %v2162_v2 }
 0x66f   : > { %1344 = vmatpush1.bf16.msra.mxu0 %v2743_v13  ;;  %1883 = vmatpush3.bf16.msra.mxu1 %v2749_v14 }
 0x670   : > { %1345 = vmatprep.subr.bf16.mxu0 %v2755_v15  ;;  %1884 = vmatprep.subr.bf16.mxu1 %v2162_v2  ;;  %v1643_v15 = vld [vmem:[%s2410_s23 + $0x140] sm:$0xff] }
 0x673   : > { %1346 = vmatpush1.bf16.msra.mxu0 %v2762_v16  ;;  %1885 = vmatpush3.bf16.msra.mxu1 %v2768_v17 }
 0x674   : > { %1347 = vmatprep.subr.bf16.mxu0 %v2774_v18  ;;  %1886 = vmatprep.subr.bf16.mxu1 %v2162_v2 }
 0x677   : > { %1348 = vmatpush1.bf16.msra.mxu0 %v2781_v19  ;;  %1887 = vmatpush3.bf16.msra.mxu1 %v2787_v20 }
 0x678   : > { %1349 = vmatprep.subr.bf16.mxu0 %v2793_v21  ;;  %1888 = vmatprep.subr.bf16.mxu1 %v2162_v2 }
 0x67b   : > { %1350 = vmatpush1.bf16.msra.mxu0 %v2800_v22  ;;  %1889 = vmatpush3.bf16.msra.mxu1 %v2806_v23 }
 0x731   : > { %v1235_v42 = vpop.f32.mrb[24].mxu0  ;;  %v1278_v43 = vpop.f32.mrb[24].mxu1 }
 0x732   : > { %v1236_v46 = vadd.f32 %v1235_v42, %v2412_v31  ;;  %v1237_v44 = vpop.f32.mrb[25].mxu0  ;;  %v1872_v45 = vpop.f32.mrb[25].mxu1  ;;  %v1279_v37 = vadd.f32 %v1278_v43, %v2424_v62  ;;  %v1652_v42 = vld [vmem:[%s2410_s23 + $0x168] sm:$0xff] }
 0x733   : > { %v1238_v4 = vadd.f32 %v1237_v44, %v2414_v32  ;;  %v1239_v6 = vpop.f32.mrb[26].mxu0  ;;  %v1281_v7 = vpop.f32.mrb[26].mxu1  ;;  %v1650_v45 = vld [vmem:[%s2410_s23 + $0x158] sm:$0xff] }
 0x734   : > { %v1285_v8 = vadd.f32 %v1639_v3, %v1236_v46  ;;  %v1240_v2 = vadd.f32 %v1239_v6, %v2412_v31  ;;  %v1241_v10 = vpop.f32.mrb[27].mxu0  ;;  %v1873_v11 = vpop.f32.mrb[27].mxu1  ;;  %v1282_v30 = vadd.f32 %v1281_v7, %v2424_v62 }
 0x735   : > { %v1242_v12 = vadd.f32 %v1241_v10, %v2414_v32  ;;  %v1299_v16 = vadd.f32 %v1640_v9, %v1238_v4 }
 0x736   : > { %v1645_v13 = vmul.f32 -1.442695, %v1285_v8  ;;  %v1286_v14 = vadd.f32 %v1642_v5, %v1240_v2  ;;  %v1653_v2 = vld [vmem:[%s2410_s23 + $0x170] sm:$0xff] }
 0x737   : > { %v1300_v18 = vadd.f32 %v1643_v15, %v1242_v12  ;;  %v1647_v19 = vmul.f32 -1.442695, %v1299_v16 }
 0x738   : > { %2074 = vpow2.f32 %v1645_v13  ;;  %v1646_v17 = vmul.f32 -1.442695, %v1286_v14 }
 0x739   : > { %v1648_v20 = vmul.f32 -1.442695, %v1300_v18 }
 0x73a   : > { %2076 = vpow2.f32 %v1646_v17 }
 0x73b   : > { %2078 = vpow2.f32 %v1647_v19 }
 0x73c   : > { %2080 = vpow2.f32 %v1648_v20 }
 0x742   : > { %v2075_v21 = vpop.eup %2074 }
 0x743   : > { %v1293_v22 = vadd.f32 1.0, %v2075_v21 }
 0x744   : > { %v2077_v23 = vpop.eup %2076 }
 0x745   : > { %2082 = vrcp.f32 %v1293_v22  ;;  %v1294_v34 = vadd.f32 1.0, %v2077_v23  ;;  %v2079_v35 = vpop.eup %2078  ;;  %v1651_v23 = vld [vmem:[%s2410_s23 + $0x160] sm:$0xff] }
 0x746   : > { %v2081_v56 = vpop.eup %2080  ;;  %v1307_v36 = vadd.f32 1.0, %v2079_v35 }
 0x747   : > { %2084 = vrcp.f32 %v1294_v34  ;;  %v1308_v27 = vadd.f32 1.0, %v2081_v56 }
 0x748   : > { %2086 = vrcp.f32 %v1307_v36  ;;  %v1654_v36 = vld [vmem:[%s2410_s23 + $0x178] sm:$0xff]  ;;  %s211_s23 = scalar_lea.vmem %s2914_s3, %s1661_s28 }
 0x749   : > { %2088 = vrcp.f32 %v1308_v27 }
 0x74f   : > { %v2083_v26 = vpop.eup %2082 }
 0x750   : > { %v1313_v0 = vmul.f32 %v2083_v26, %v1279_v37 }
 0x751   : > { %v2085_v51 = vpop.eup %2084 }
 0x752   : > { %v1315_v38 = vadd.f32 %v1641_v29, %v1313_v0  ;;  %v1314_v24 = vmul.f32 %v2085_v51, %v1282_v30  ;;  %v2087_v63 = vpop.eup %2086 }
 0x753   : > { %v2089_v47 = vpop.eup %2088  ;;  %v1319_v49 = vsub.f32 1.0, %v2087_v63  ;;  %v1323_v41 = vmul.f32 %v2087_v63, %v2825_v39 }
 0x754   : > { %2090 = vtanh.f32 %v1315_v38  ;;  %v1316_v25 = vadd.f32 %v1644_v52, %v1314_v24  ;;  %v1320_v53 = vsub.f32 1.0, %v2089_v47  ;;  %v1324_v1 = vmul.f32 %v2089_v47, %v2827_v40 }
 0x756   : > { %2092 = vtanh.f32 %v1316_v25 }
 0x75e   : > { %v2091_v50 = vpop.eup %2090 }
 0x75f   : > { %v1321_v54 = vmul.f32 %v2091_v50, %v1319_v49 }
 0x760   : > { %v2093_v57 = vpop.eup %2092 }
 0x761   : > { %v1322_v58 = vmul.f32 %v2093_v57, %v1320_v53  ;;  %v2878_v61 = vadd.f32 %v1323_v41, %v1321_v54 }
 0x763   : > { %v2880_v59 = vadd.f32 %v1324_v1, %v1322_v58 }
 0x765   : > { %v1334_v60 = vpack.c.bf16 %v2880_v59, %v2878_v61 }
 0x767   : > { %1368 = vmatmul.mubr.bf16.vlgmr.msra.gmra.mrb[28].mxu0 %v1334_v60  ;;  %1891 = vmatmul.mubr.bf16.vlgmr.msra.gmra.mrb[28].mxu1 %v1334_v60 }
 0x83a   : > { %v1369_v28 = vpop.f32.mrb[28].mxu0  ;;  %v1412_v55 = vpop.f32.mrb[28].mxu1 }
 0x83b   : > { %v1370_v39 = vadd.f32 %v1369_v28, %v2412_v31  ;;  %v1371_v33 = vpop.f32.mrb[29].mxu0  ;;  %v1892_v3 = vpop.f32.mrb[29].mxu1  ;;  %v1413_v20 = vadd.f32 %v1412_v55, %v2424_v62 }
 0x83c   : > { %v1372_v40 = vadd.f32 %v1371_v33, %v2414_v32  ;;  %v1373_v43 = vpop.f32.mrb[30].mxu0  ;;  %v1415_v46 = vpop.f32.mrb[30].mxu1 }
 0x83d   : > { %v1419_v44 = vadd.f32 %v1649_v48, %v1370_v39  ;;  %v1374_v4 = vadd.f32 %v1373_v43, %v2412_v31  ;;  %v1375_v5 = vpop.f32.mrb[31].mxu0  ;;  %v1893_v6 = vpop.f32.mrb[31].mxu1  ;;  %v1416_v35 = vadd.f32 %v1415_v46, %v2424_v62 }
 0x83e   : > { %v1376_v7 = vadd.f32 %v1375_v5, %v2414_v32  ;;  %v1433_v10 = vadd.f32 %v1650_v45, %v1372_v40 }
 0x83f   : > { %v1655_v8 = vmul.f32 -1.442695, %v1419_v44  ;;  %v1420_v9 = vadd.f32 %v1652_v42, %v1374_v4 }
 0x840   : > { %v1434_v12 = vadd.f32 %v1653_v2, %v1376_v7  ;;  %v1657_v13 = vmul.f32 -1.442695, %v1433_v10 }
 0x841   : > { %2094 = vpow2.f32 %v1655_v8  ;;  %v1656_v11 = vmul.f32 -1.442695, %v1420_v9 }
 0x842   : > { %v1658_v14 = vmul.f32 -1.442695, %v1434_v12 }
 0x843   : > { %2096 = vpow2.f32 %v1656_v11 }
 0x844   : > { %2098 = vpow2.f32 %v1657_v13 }
 0x845   : > { %2100 = vpow2.f32 %v1658_v14 }
 0x84b   : > { %v2095_v15 = vpop.eup %2094 }
 0x84c   : > { %v1427_v16 = vadd.f32 1.0, %v2095_v15 }
 0x84d   : > { %v2097_v31 = vpop.eup %2096 }
 0x84e   : > { %2102 = vrcp.f32 %v1427_v16  ;;  %v1428_v17 = vadd.f32 1.0, %v2097_v31  ;;  %v2099_v32 = vpop.eup %2098 }
 0x84f   : > { %v2101_v18 = vpop.eup %2100  ;;  %v1441_v19 = vadd.f32 1.0, %v2099_v32 }
 0x850   : > { %2104 = vrcp.f32 %v1428_v17  ;;  %v1442_v21 = vadd.f32 1.0, %v2101_v18 }
 0x851   : > { %2106 = vrcp.f32 %v1441_v19 }
 0x852   : > { %2108 = vrcp.f32 %v1442_v21 }
 0x858   : > { %v2103_v22 = vpop.eup %2102 }
 0x859   : > { %v1447_v34 = vmul.f32 %v2103_v22, %v1413_v20 }
 0x85a   : > { %v2105_v56 = vpop.eup %2104 }
 0x85b   : > { %v1449_v37 = vadd.f32 %v1651_v23, %v1447_v34  ;;  %v1448_v27 = vmul.f32 %v2105_v56, %v1416_v35  ;;  %v2107_v29 = vpop.eup %2106 }
 0x85c   : > { %v2109_v0 = vpop.eup %2108  ;;  %v1453_v30 = vsub.f32 1.0, %v2107_v29  ;;  %v1457_v38 = vmul.f32 %v2107_v29, %v2878_v61 }
 0x85d   : > { %2110 = vtanh.f32 %v1449_v37  ;;  %v1450_v26 = vadd.f32 %v1654_v36, %v1448_v27  ;;  %v1454_v24 = vsub.f32 1.0, %v2109_v0  ;;  %v1458_v47 = vmul.f32 %v2109_v0, %v2880_v59 }
 0x85f   : > { %2112 = vtanh.f32 %v1450_v26 }
 0x867   : > { %v2111_v51 = vpop.eup %2110 }
 0x868   : > { %v1455_v52 = vmul.f32 %v2111_v51, %v1453_v30 }
 0x869   : > { %v2113_v25 = vpop.eup %2112 }
 0x86a   : > { %v1459_v62 = vadd.f32 %v1457_v38, %v1455_v52  ;;  %v1456_v63 = vmul.f32 %v2113_v25, %v1454_v24 }
 0x86c   : > { %1461 = vst [vmem:[%s211_s23] sm:$0xff] %v1459_v62  ;;  %v1460_v49 = vadd.f32 %v1458_v47, %v1456_v63 }
 0x86e   : > { %1462 = vst [vmem:[%s211_s23 + $0x8] sm:$0xff] %v1460_v49 }
 0x86f PF: > { %s13_s14 = sadd.s32 1, %s2160_s14   ;;  %s2915_s12 = smov %s2156_s13 }
 0x870   : > { %p10_p5 = scmp.ge.s32.totalorder %s13_s14, 4   ;;  %s2916_s13 = smov %s2918_s15 }
 0x872   :  { %12 = sbr.rel (!%p10_p5) target bundleno = 2 (0x2), region = 69 }

// kernel: time_then_space_forward.3
= control target key start
LH: loop header
LB: loop body
LE: loop exit
PB: predicated region body
PF: predicated region fallthrough
CT: control target
= control target key end

     0   :  { %s1412_s24 = smov 0   ;;  %s1629_s0 = inlined_call_operand.vmem [shape: bf16[2,16,128], index: 0, kind: input, shape index: {}]   ;;  %s1630_s1 = inlined_call_operand.vmem [shape: bf16[16,16], index: 1, kind: input, shape index: {}]   ;;  %s1631_s2 = inlined_call_operand.vmem [shape: bf16[16,16], index: 2, kind: input, shape index: {}]   ;;  %s1632_s3 = inlined_call_operand.vmem [shape: bf16[640,128], index: 3, kind: input, shape index: {}]   ;;  %s1633_s4 = inlined_call_operand.vmem [shape: f32[1,128], index: 4, kind: input, shape index: {}]   ;;  %s1634_s5 = inlined_call_operand.vmem [shape: bf16[128,128], index: 5, kind: input, shape index: {}]   ;;  %s1635_s6 = inlined_call_operand.vmem [shape: f32[1,128], index: 6, kind: input, shape index: {}]   ;;  %s1636_s7 = inlined_call_operand.vmem [shape: f32[2,16,128], index: 7, kind: output, shape index: {}]  }
   0x1 LB: > { %s1097_s25 = sadd.s32 4294967295, %s1368_s24   ;;  %p1101_p0 = scmp.ge.s32.totalorder %s1368_s24, 1  ;;  %s1368_s24 = sphi %s1412_s24, %s17_s24  }
   0x2   : > { %p237_p1 = scmp.lt.s32.totalorder %s1368_s24, 3 }
   0x4   : > { %p238_p2 = pnand %p1101_p0, %p237_p1 }
   0x5   : > { %p269_p3 = scmp.lt.s32.totalorder (!%p238_p2), %s1097_s25, 1  ;;  %v1370_v0 = vmov (!%p238_p2), 0.0   ;;  %vm1371_vm0 = vmmov (!%p238_p2), 0   ;;  %v1312_v1 = vld [vmem:[%s1630_s1] sm:$0xff] (!%p238_p2)   ;;  %vm295_vm1 = vcmask (!%p238_p2), 130048   ;;  %v1316_v6 = vld [vmem:[%s1632_s3 + $0x48] sm:$0xff] (!%p238_p2)  }
   0x6   : > { %241 = sbr.rel (%p238_p2) target bundleno = 898 (0x382), region = 48  ;;  %1237 = vmatprep.subr.bf16.mxu0 (!%p238_p2), %v1370_v0  ;;  %1239 = vmatprep.mubr.msk.bf16.mxu0 (!%p238_p2), %vm1371_vm0, %v1370_v0  ;;  %v1442_v3 = vld [vmem:[%s1631_s2] sm:$0xff] (!%p238_p2)   ;;  %v1317_v7 = vld [vmem:[%s1632_s3 + $0x8] sm:$0xff] (!%p238_p2)   ;;  %v1318_v8 = vld [vmem:[%s1632_s3 + $0x50] sm:$0xff] (!%p238_p2)  }
   0x7   : > { %1243 = vmatprep.subr.bf16.mxu1 (!%p238_p2), %v1370_v0  ;;  %1245 = vmatprep.mubr.msk.bf16.mxu1 (!%p238_p2), %vm1371_vm0, %v1370_v0  ;;  %v1314_v4 = vld [vmem:[%s1632_s3 + $0x40] sm:$0xff] (!%p238_p2)   ;;  %v1319_v9 = vld [vmem:[%s1632_s3 + $0x10] sm:$0xff] (!%p238_p2)   ;;  %v1320_v10 = vld [vmem:[%s1632_s3 + $0x58] sm:$0xff] (!%p238_p2)  }
   0x8   : > { %v1315_v5 = vld [vmem:[%s1632_s3] sm:$0xff] (!%p238_p2)   ;;  %v1321_v11 = vld [vmem:[%s1632_s3 + $0x18] sm:$0xff] (!%p238_p2)   ;;  %v1324_v14 = vld [vmem:[%s1632_s3 + $0x68] sm:$0xff] (!%p238_p2)  }
   0x9   : > { %v1322_v12 = vld [vmem:[%s1632_s3 + $0x60] sm:$0xff] (!%p238_p2)   ;;  %v1325_v15 = vld [vmem:[%s1632_s3 + $0x28] sm:$0xff] (!%p238_p2)   ;;  %v1326_v16 = vld [vmem:[%s1632_s3 + $0x70] sm:$0xff] (!%p238_p2)  }
   0xa   : > { %v1323_v13 = vld [vmem:[%s1632_s3 + $0x20] sm:$0xff] (!%p238_p2)   ;;  %v1328_v17 = vld [vmem:[%s1632_s3 + $0x30] sm:$0xff] (!%p238_p2)   ;;  %v1330_v18 = vld [vmem:[%s1632_s3 + $0x78] sm:$0xff] (!%p238_p2)  }
   0xb   : > { %v1332_v19 = vld [vmem:[%s1632_s3 + $0x38] sm:$0xff] (!%p238_p2)   ;;  %v1336_v25 = vld [vmem:[%s1632_s3 + $0x100] sm:$0xff] (!%p238_p2)   ;;  %v1339_v26 = vld [vmem:[%s1632_s3 + $0x108] sm:$0xff] (!%p238_p2)  }
   0xc   : > { %v1327_v30 = vld [vmem:[%s1632_s3 + $0xc0] sm:$0xff] (!%p238_p2)   ;;  %v1342_v33 = vld [vmem:[%s1632_s3 + $0x110] sm:$0xff] (!%p238_p2)   ;;  %v1331_v35 = vld [vmem:[%s1632_s3 + $0xc8] sm:$0xff] (!%p238_p2)  }
   0xd   : > { %s1638_s25 = smov (!%p269_p3, %s1097_s25), 1  ;;  %v1329_v34 = vld [vmem:[%s1632_s3 + $0x80] sm:$0xff]   ;;  %v1345_v36 = vld [vmem:[%s1632_s3 + $0x118] sm:$0xff]   ;;  %v1333_v37 = vld [vmem:[%s1632_s3 + $0x88] sm:$0xff]  }
   0xe   : > { %s1165_s26 = sshll.u32 %s1638_s25, 3  ;;  %v1334_v38 = vld [vmem:[%s1632_s3 + $0xd0] sm:$0xff]   ;;  %v1348_v39 = vld [vmem:[%s1632_s3 + $0x120] sm:$0xff]   ;;  %v1337_v41 = vld [vmem:[%s1632_s3 + $0xd8] sm:$0xff]   ;;  %s1166_s27 = sshll.u32 %s1638_s25, 4 }
   0xf   : > { %s273_s29 = scalar_lea.vmem %s1629_s0, %s1165_s26  ;;  %v1335_v40 = vld [vmem:[%s1632_s3 + $0x90] sm:$0xff]   ;;  %v1338_v42 = vld [vmem:[%s1632_s3 + $0x98] sm:$0xff]   ;;  %v1340_v43 = vld [vmem:[%s1632_s3 + $0xe0] sm:$0xff]   ;;  %s278_s9 = scalar_lea.vmem %s1636_s7, %s1166_s27 }
  0x10   : > { %v1311_v2 = vld [vmem:[%s273_s29] sm:$0xff]   ;;  %v1343_v45 = vld [vmem:[%s1632_s3 + $0xe8] sm:$0xff]   ;;  %v1346_v47 = vld [vmem:[%s1632_s3 + $0xf0] sm:$0xff]  }
  0x11   : > { %1238 = vmatpush3.bf16.msra.mxu0 %v1311_v2  ;;  %v1341_v44 = vld [vmem:[%s1632_s3 + $0xa0] sm:$0xff]   ;;  %v1344_v46 = vld [vmem:[%s1632_s3 + $0xa8] sm:$0xff]   ;;  %v1347_v48 = vld [vmem:[%s1632_s3 + $0xb0] sm:$0xff]  }
  0x12   : > { %1249 = vmatprep.subr.bf16.mxu0 %v1370_v0  ;;  %v1349_v49 = vld [vmem:[%s1632_s3 + $0xf8] sm:$0xff]   ;;  %v1351_v51 = vld [vmem:[%s1632_s3 + $0x128] sm:$0xff]   ;;  %v1352_v52 = vld [vmem:[%s1632_s3 + $0x130] sm:$0xff]  }
  0x13   : > { %v1350_v50 = vld [vmem:[%s1632_s3 + $0xb8] sm:$0xff]   ;;  %v1354_v63 = vld [vmem:[%s1634_s5] sm:$0xff]  }
  0x14   : > { %1240 = vmatmul.mubr.msk.bf16.vlgmr.msra.gmra.mrb[0].mxu0 %vm295_vm1, %v1312_v1  ;;  %v1353_v53 = vld [vmem:[%s1632_s3 + $0x138] sm:$0xff]  }
  0x15   : > { %1250 = vmatpush3.bf16.msra.mxu0 %v1311_v2  ;;  %1251 = vmatprep.mubr.msk.bf16.mxu0 %vm1371_vm0, %v1370_v0 }
  0x16   : > { %1175 = vmatprep.subr.bf16.mxu0 %v1314_v4 }
  0x1c   : > { %1252 = vmatmul.mubr.msk.bf16.vlgmr.msra.gmra.mrb[4].mxu0 %vm295_vm1, %v1442_v3 }
  0x1d   : > { %1176 = vmatpush3.bf16.msra.mxu0 %v1315_v5 }
  0x1e   : > { %1177 = vmatprep.subr.bf16.mxu0 %v1316_v6 }
  0x21   : > { %1178 = vmatpush3.bf16.msra.mxu0 %v1317_v7  ;;  %v1356_v7 = vld [vmem:[%s1634_s5 + $0x10] sm:$0xff]  }
  0x22   : > { %1179 = vmatprep.subr.bf16.mxu0 %v1318_v8 }
  0x25   : > { %1180 = vmatpush3.bf16.msra.mxu0 %v1319_v9 }
  0x26   : > { %1181 = vmatprep.subr.bf16.mxu0 %v1320_v10  ;;  %v1357_v10 = vld [vmem:[%s1634_s5 + $0x18] sm:$0xff]  }
  0x29   : > { %1182 = vmatpush3.bf16.msra.mxu0 %v1321_v11  ;;  %v1358_v11 = vld [vmem:[%s1634_s5 + $0x20] sm:$0xff]  }
  0x2a   : > { %1183 = vmatprep.subr.bf16.mxu0 %v1322_v12  ;;  %v1359_v12 = vld [vmem:[%s1634_s5 + $0x28] sm:$0xff]  }
  0x2d   : > { %1184 = vmatpush3.bf16.msra.mxu0 %v1323_v13  ;;  %v1360_v13 = vld [vmem:[%s1634_s5 + $0x30] sm:$0xff]  }
  0x2e   : > { %1185 = vmatprep.subr.bf16.mxu0 %v1324_v14  ;;  %v1361_v14 = vld [vmem:[%s1634_s5 + $0x38] sm:$0xff]  }
  0x31   : > { %1186 = vmatpush3.bf16.msra.mxu0 %v1325_v15  ;;  %v1113_v15 = vld [vmem:[%s1633_s4] ss:$0 sm:$0xff] }
  0x32   : > { %1187 = vmatprep.subr.bf16.mxu0 %v1326_v16 }
  0x35   : > { %1188 = vmatpush3.bf16.msra.mxu0 %v1328_v17 }
  0x36   : > { %1189 = vmatprep.subr.bf16.mxu0 %v1330_v18 }
  0x39   : > { %1190 = vmatpush3.bf16.msra.mxu0 %v1332_v19 }
  0x3a   : > { %1261 = vmatprep.subr.bf16.mxu0 %v1370_v0 }
  0xe7   : > { %v333_v20 = vpop.f32.mrb[0].mxu0 }
  0xe8   : > { %v1241_v21 = vpop.f32.mrb[1].mxu0 }
  0xe9   : > { %v336_v22 = vpop.f32.mrb[2].mxu0 }
  0xea   : > { %v340_v23 = vpack.c.bf16 %v336_v22, %v333_v20  ;;  %v1242_v24 = vpop.f32.mrb[3].mxu0 }
  0xec   : > { %1244 = vmatpush3.bf16.msra.mxu1 %v340_v23  ;;  %836 = vmatprep.mubr.bf16.mxu0 %v340_v23 }
  0xed   : > { %1255 = vmatprep.subr.bf16.mxu1 %v1370_v0  ;;  %837 = vmatmul.mubr.bf16.vlgmr.msra.gmra.mrb[8].mxu0 %v1311_v2 }
  0xee   : > { %1262 = vmatpush3.bf16.msra.mxu0 %v1336_v25  ;;  %1277 = vmatprep.mubr.msk.bf16.mxu0 %vm1371_vm0, %v1370_v0 }
  0xef   : > { %1246 = vmatmul.mubr.msk.bf16.vlgmr.msra.gmra.mrb[0].mxu1 %vm295_vm1, %v1312_v1  ;;  %v427_v27 = vpop.f32.mrb[4].mxu0  ;;  %1263 = vmatprep.subr.bf16.mxu0 %v1370_v0 }
  0xf0   : > { %v1253_v28 = vpop.f32.mrb[5].mxu0  ;;  %1257 = vmatprep.mubr.msk.bf16.mxu1 %vm1371_vm0, %v1370_v0 }
  0xf1   : > { %v430_v29 = vpop.f32.mrb[6].mxu0 }
  0xf2   : > { %v434_v31 = vpack.c.bf16 %v430_v29, %v427_v27  ;;  %v1254_v32 = vpop.f32.mrb[7].mxu0  ;;  %1264 = vmatpush3.bf16.msra.mxu0 %v1339_v26 }
  0xf3   : > { %1265 = vmatprep.subr.bf16.mxu0 %v1370_v0  ;;  %v1154_v32 = vld [vmem:[%s1635_s6] ss:$0 sm:$0xff] }
  0xf4   : > { %1256 = vmatpush3.bf16.msra.mxu1 %v434_v31 }
  0xf5   : > { %1197 = vmatprep.subr.bf16.mxu1 %v1327_v30 }
  0xf6   : > { %1266 = vmatpush3.bf16.msra.mxu0 %v1342_v33 }
  0xf7   : > { %1258 = vmatmul.mubr.msk.bf16.vlgmr.msra.gmra.mrb[4].mxu1 %vm295_vm1, %v1442_v3  ;;  %1267 = vmatprep.subr.bf16.mxu0 %v1370_v0  ;;  %v1355_v3 = vld [vmem:[%s1634_s5 + $0x8] sm:$0xff]  }
  0xf8   : > { %877 = vmatprep.mubr.bf16.mxu1 %v434_v31  ;;  %1198 = vmatpush3.bf16.msra.mxu1 %v1329_v34 }
  0xf9   : > { %1199 = vmatprep.subr.bf16.mxu1 %v1331_v35 }
  0xfa   : > { %1268 = vmatpush3.bf16.msra.mxu0 %v1345_v36 }
  0xfb   : > { %1269 = vmatprep.subr.bf16.mxu0 %v1370_v0 }
  0xfc   : > { %1200 = vmatpush3.bf16.msra.mxu1 %v1333_v37 }
  0xfd   : > { %1201 = vmatprep.subr.bf16.mxu1 %v1334_v38 }
  0xfe   : > { %1270 = vmatpush3.bf16.msra.mxu0 %v1348_v39 }
  0xff   : > { %1271 = vmatprep.subr.bf16.mxu0 %v1370_v0 }
 0x100   : > { %1202 = vmatpush3.bf16.msra.mxu1 %v1335_v40 }
 0x101   : > { %1203 = vmatprep.subr.bf16.mxu1 %v1337_v41 }
 0x102   : > { %1272 = vmatpush3.bf16.msra.mxu0 %v1351_v51 }
 0x103   : > { %1273 = vmatprep.subr.bf16.mxu0 %v1370_v0 }
 0x104   : > { %1204 = vmatpush3.bf16.msra.mxu1 %v1338_v42 }
 0x105   : > { %1205 = vmatprep.subr.bf16.mxu1 %v1340_v43 }
 0x106   : > { %1274 = vmatpush3.bf16.msra.mxu0 %v1352_v52 }
 0x107   : > { %1275 = vmatprep.subr.bf16.mxu0 %v1370_v0 }
 0x108   : > { %1206 = vmatpush3.bf16.msra.mxu1 %v1341_v44 }
 0x109   : > { %1207 = vmatprep.subr.bf16.mxu1 %v1343_v45 }
 0x10a   : > { %1276 = vmatpush3.bf16.msra.mxu0 %v1353_v53 }
 0x10c   : > { %1208 = vmatpush3.bf16.msra.mxu1 %v1344_v46 }
 0x10d   : > { %1209 = vmatprep.subr.bf16.mxu1 %v1346_v47 }
 0x110   : > { %1210 = vmatpush3.bf16.msra.mxu1 %v1347_v48 }
 0x111   : > { %1211 = vmatprep.subr.bf16.mxu1 %v1349_v49 }
 0x114   : > { %1212 = vmatpush3.bf16.msra.mxu1 %v1350_v50 }
 0x115   : > { %1281 = vmatprep.subr.bf16.mxu1 %v1370_v0 }
 0x1c0   : > { %v1191_v54 = vpop.f32.mrb[8].mxu0 }
 0x1c1   : > { %v1192_v55 = vpop.f32.mrb[9].mxu0 }
 0x1c2   : > { %v375_v56 = vpop.f32.mrb[0].mxu1  ;;  %v1193_v57 = vadd.f32 %v1192_v55, %v1191_v54  ;;  %v1194_v58 = vpop.f32.mrb[10].mxu0 }
 0x1c3   : > { %v1247_v59 = vpop.f32.mrb[1].mxu1  ;;  %v1195_v60 = vpop.f32.mrb[11].mxu0 }
 0x1c4   : > { %v378_v61 = vpop.f32.mrb[2].mxu1  ;;  %v1196_v62 = vadd.f32 %v1195_v60, %v1194_v58  ;;  %v839_v18 = vadd.f32 %v1193_v57, %v1113_v15 }
 0x1c5   : > { %v382_v1 = vpack.c.bf16 %v378_v61, %v375_v56  ;;  %v1248_v2 = vpop.f32.mrb[3].mxu1 }
 0x1c6   : > { %v842_v22 = vadd.f32 %v1196_v62, %v1113_v15 }
 0x1c7   : > { %878 = vmatmul.mubr.bf16.vlgmr.msra.gmra.mrb[8].mxu1 %v382_v1 }
 0x1c8   : > { %1282 = vmatpush3.bf16.msra.mxu1 %v1354_v63  ;;  %1297 = vmatprep.mubr.msk.bf16.mxu1 %vm1371_vm0, %v1370_v0 }
 0x1c9   : > { %1283 = vmatprep.subr.bf16.mxu1 %v1370_v0 }
 0x1ca   : > { %v469_v4 = vpop.f32.mrb[4].mxu1 }
 0x1cb   : > { %v1259_v5 = vpop.f32.mrb[5].mxu1 }
 0x1cc   : > { %v472_v6 = vpop.f32.mrb[6].mxu1  ;;  %1284 = vmatpush3.bf16.msra.mxu1 %v1355_v3 }
 0x1cd   : > { %v476_v8 = vpack.c.bf16 %v472_v6, %v469_v4  ;;  %v1260_v9 = vpop.f32.mrb[7].mxu1  ;;  %1285 = vmatprep.subr.bf16.mxu1 %v1370_v0 }
 0x1cf   : > { %1278 = vmatmul.mubr.bf16.vlgmr.msra.gmra.mrb[12].mxu0 %v476_v8 }
 0x1d0   : > { %1286 = vmatpush3.bf16.msra.mxu1 %v1356_v7 }
 0x1d1   : > { %1287 = vmatprep.subr.bf16.mxu1 %v1370_v0 }
 0x1d4   : > { %1288 = vmatpush3.bf16.msra.mxu1 %v1357_v10 }
 0x1d5   : > { %1289 = vmatprep.subr.bf16.mxu1 %v1370_v0 }
 0x1d8   : > { %1290 = vmatpush3.bf16.msra.mxu1 %v1358_v11 }
 0x1d9   : > { %1291 = vmatprep.subr.bf16.mxu1 %v1370_v0 }
 0x1dc   : > { %1292 = vmatpush3.bf16.msra.mxu1 %v1359_v12 }
 0x1dd   : > { %1293 = vmatprep.subr.bf16.mxu1 %v1370_v0 }
 0x1e0   : > { %1294 = vmatpush3.bf16.msra.mxu1 %v1360_v13 }
 0x1e1   : > { %1295 = vmatprep.subr.bf16.mxu1 %v1370_v0 }
 0x1e4   : > { %1296 = vmatpush3.bf16.msra.mxu1 %v1361_v14 }
 0x29a   : > { %v1213_v16 = vpop.f32.mrb[8].mxu1 }
 0x29b   : > { %v1214_v17 = vpop.f32.mrb[9].mxu1 }
 0x29c   : > { %v1215_v19 = vadd.f32 %v1214_v17, %v1213_v16  ;;  %v1216_v20 = vpop.f32.mrb[10].mxu1 }
 0x29d   : > { %v1217_v21 = vpop.f32.mrb[11].mxu1 }
 0x29e   : > { %v1218_v23 = vadd.f32 %v1217_v21, %v1216_v20  ;;  %v880_v24 = vadd.f32 %v1215_v19, %v839_v18 }
 0x2a0   : > { %v883_v0 = vadd.f32 %v1218_v23, %v842_v22 }
 0x2a2   : > { %v920_v25 = vpop.f32.mrb[12].mxu0 }
 0x2a3   : > { %v921_v26 = vadd.f32 %v920_v25, %v880_v24  ;;  %v1279_v27 = vpop.f32.mrb[13].mxu0 }
 0x2a4   : > { %v923_v28 = vpop.f32.mrb[14].mxu0 }
 0x2a5   : > { %v924_v29 = vadd.f32 %v923_v28, %v883_v0  ;;  %v1280_v30 = vpop.f32.mrb[15].mxu0 }
 0x2a7   : > { %v927_v31 = vpack.c.bf16 %v924_v29, %v921_v26 }
 0x2a9   : > { %1298 = vmatmul.mubr.bf16.vlgmr.msra.gmra.mrb[12].mxu1 %v927_v31 }
 0x37c   : > { %v1033_v33 = vpop.f32.mrb[12].mxu1 }
 0x37d   : > { %v1034_v34 = vadd.f32 %v1154_v32, %v1033_v33  ;;  %v1299_v35 = vpop.f32.mrb[13].mxu1 }
 0x37e   : > { %v1036_v36 = vpop.f32.mrb[14].mxu1 }
 0x37f   : > { %1040 = vst [vmem:[%s278_s9] sm:$0xff] %v1034_v34  ;;  %v1037_v37 = vadd.f32 %v1154_v32, %v1036_v36  ;;  %v1300_v38 = vpop.f32.mrb[15].mxu1 }
 0x381   : > { %1041 = vst [vmem:[%s278_s9 + $0x8] sm:$0xff] %v1037_v37 }
 0x382 PF: > { %s17_s24 = sadd.s32 1, %s1368_s24  }
 0x383   : > { %p14_p4 = scmp.ge.s32.totalorder %s17_s24, 4  }
 0x385   :  { %16 = sbr.rel (!%p14_p4) target bundleno = 1 (0x1), region = 78 }

</bundles_post_ra>
